<compile_context>
chip_gen: v7x
topology: tpu7x:2x2x1
jax: 0.10.0
libtpu: 0.0.40
codegen_flags: <defaults>
</compile_context>

<pallas_src>
import functools

import jax
import jax.numpy as jnp
from jax.experimental import pallas as pl
from jax.experimental.pallas import tpu as pltpu

EPS = 1e-5

try:
    VMEM_LIMIT = int(min(96 * 2**20, pltpu.get_tpu_info().vmem_capacity_bytes * 3 // 4))
except Exception:   # conservative fallback, safe on every current chip
    VMEM_LIMIT = 48 * 2**20


def _round_up(x, m):
    return (x + m - 1) // m * m


def _pick_th(OH, OW, target_rows=1024):
    """Largest divisor th of OH with th*OW <= target (and th*OW % 8 == 0 unless full)."""
    divs = [d for d in range(1, OH + 1) if OH % d == 0]
    valid = [d for d in divs if d == OH or (d * OW) % 8 == 0]
    under = [d for d in valid if d * OW <= target_rows]
    return max(under) if under else min(valid)


def _pick_rows(M, cap=2048):
    """Largest divisor of M that is a multiple of 8 (or M itself), capped."""
    best = None
    for d in range(1, min(M, cap) + 1):
        if M % d == 0 and (d % 8 == 0 or d == M):
            best = d
    return best if best else M


# ----------------------------------------------------------------------------
# XLA glue (data movement only): pad + optional BN+ReLU + bf16 + tap-slab split
# ----------------------------------------------------------------------------
def _prep_slabs(x, k, stride, pad, scale=None, shift=None, relu=False):
    """One fused XLA pass replacing the old 9x f32 im2col materialization.

    Returns xs of shape (k*stride, N, Hph*OW, C): conv tap (kh, kw) reads slab
    kw*stride + (kh % stride) at flat rows (oh + kh//stride)*OW + ow, so every
    tap is one contiguous dynamic slice inside the Pallas kernel.
    """
    N, H, W, C = x.shape
    OH = (H + 2 * pad - k) // stride + 1
    OW = (W + 2 * pad - k) // stride + 1
    Hph = OH + (k - 1) // stride              # phase-image rows actually read
    rows_tot = stride * Hph
    cols_tot = W + 2 * pad
    bot = rows_tot - H - pad
    assert bot >= 0 and cols_tot >= (k - 1) + (OW - 1) * stride + 1

    xb = x
    if scale is not None:                     # fuse previous layer's BN (+ReLU)
        xb = xb.astype(jnp.float32) * scale.reshape(1, 1, 1, -1) + shift.reshape(1, 1, 1, -1)
        if relu:
            xb = jnp.maximum(xb, 0.0)
    xb = xb.astype(jnp.bfloat16)
    xb = jnp.pad(xb, ((0, 0), (pad, bot), (pad, cols_tot - W - pad), (0, 0)))

    slabs = []
    for kw in range(k):
        xk = xb[:, :, kw:kw + (OW - 1) * stride + 1:stride, :]   # (N, rows_tot, OW, C)
        for ph in range(stride):
            slabs.append(xk[:, ph::stride, :, :][:, :Hph])       # (N, Hph, OW, C)
    xs = jnp.stack(slabs, axis=0).reshape(k * stride, N, Hph * OW, C)
    return xs, OH, OW


def _prep_weight(w_oihw, Cp, taps):
    """(Cout, Cin, kh, kw) -> (n_taps, Cin, Cp) bf16, output channels zero-padded."""
    Cout = w_oihw.shape[0]
    mats = [w_oihw[:, :, kh, kw].T for (kh, kw) in taps]         # each (Cin, Cout)
    wt = jnp.stack(mats, axis=0)
    wt = jnp.pad(wt, ((0, 0), (0, 0), (0, Cp - Cout)))
    return wt.astype(jnp.bfloat16)


# ----------------------------------------------------------------------------
# Kernel A: conv via in-kernel taps (MXU, f32 acc) + streaming BN batch stats
# ----------------------------------------------------------------------------
def _conv_kernel(xs_ref, w_ref, y_ref, st_ref, acc_ref, *, taps, stride, th, OW):
    i = pl.program_id(1)
    rows = th * OW
    for t, (kh, kw) in enumerate(taps):
        sidx = kw * stride + (kh % stride)     # which column-shift / row-phase slab
        dh = kh // stride                      # whole-row offset inside that slab
        start = (i * th + dh) * OW
        a = xs_ref[sidx, 0, pl.ds(start, rows), :]               # (rows, Cin) bf16
        d = jnp.dot(a, w_ref[t], preferred_element_type=jnp.float32)
        if t == 0:
            acc_ref[...] = d
        else:
            acc_ref[...] += d
    acc = acc_ref[...]
    y_ref[0] = acc.astype(y_ref.dtype)                           # bf16 slab
    ssum = jnp.sum(acc, axis=0, keepdims=True)
    ssq = jnp.sum(acc * acc, axis=0, keepdims=True)
    st_ref[0, 0] = jnp.concatenate([ssum, ssq], axis=0)          # (2, Cp), one store


def _conv(xs, wt, taps, stride, N, OH, OW, Cp):
    """Conv over pre-split tap slabs.  Weight fully VMEM-resident, per-image
    slabs DMA'd once and revisited across row tiles."""
    n_slabs, _, flat, Cin = xs.shape
    n_taps = wt.shape[0]
    th = _pick_th(OH, OW)
    rows = th * OW
    n_h = OH // th
    kern = functools.partial(_conv_kernel, taps=tuple(taps), stride=stride, th=th, OW=OW)
    # TODO(synk): for very large feature maps, tile H with a halo instead of
    # holding the whole per-image slab set in VMEM.
    return pl.pallas_call(
        kern,
        out_shape=(jax.ShapeDtypeStruct((N, OH * OW, Cp), jnp.bfloat16),
                   jax.ShapeDtypeStruct((N, n_h, 2, Cp), jnp.float32)),
        grid=(N, n_h),
        in_specs=[pl.BlockSpec((n_slabs, 1, flat, Cin), lambda n, i: (0, n, 0, 0)),
                  pl.BlockSpec((n_taps, Cin, Cp), lambda n, i: (0, 0, 0))],
        out_specs=(pl.BlockSpec((1, rows, Cp), lambda n, i: (n, i, 0)),
                   pl.BlockSpec((1, 1, 2, Cp), lambda n, i: (n, i, 0, 0))),
        scratch_shapes=[pltpu.VMEM((rows, Cp), jnp.float32)],
        compiler_params=pltpu.CompilerParams(
            dimension_semantics=("parallel", "arbitrary"),
            vmem_limit_bytes=VMEM_LIMIT),
    )(xs, wt)


def _bn_scale_shift(stats, m, gamma, beta, Cp):
    """Fold PyTorch training-mode BatchNorm (batch stats, biased variance) into
    per-channel scale/shift.  Padded channels get gamma=beta=0 -> scale=shift=0."""
    tot = jnp.sum(stats, axis=(0, 1))                            # (2, Cp) f32
    mean = tot[0] / m
    # E[y^2]-E[y]^2 in f32; per-tile partial sums keep cancellation benign here.
    # TODO(synk): centered two-pass sums if very large M/C need more digits.
    var = jnp.maximum(tot[1] / m - mean * mean, 0.0)
    Cout = gamma.shape[0]
    g = jnp.pad(gamma.reshape(-1), (0, Cp - Cout))
    b = jnp.pad(beta.reshape(-1), (0, Cp - Cout))
    scale = g * jax.lax.rsqrt(var + EPS)
    shift = b - mean * scale
    return (scale.reshape(1, Cp).astype(jnp.float32),
            shift.reshape(1, Cp).astype(jnp.float32))


# ----------------------------------------------------------------------------
# Kernel B: BN2 + (shortcut BN) + residual add + ReLU, fused, big lane-dense tile
# ----------------------------------------------------------------------------
def _bn2_add_relu_kernel(y_ref, sc_ref, sh_ref, r_ref, rsc_ref, rsh_ref, o_ref):
    out = (y_ref[...].astype(jnp.float32) * sc_ref[...] + sh_ref[...]
           + r_ref[...].astype(jnp.float32) * rsc_ref[...] + rsh_ref[...])
    o_ref[...] = jnp.maximum(out, 0.0).astype(o_ref.dtype)


def _bn2_add_identity_relu_kernel(y_ref, sc_ref, sh_ref, r_ref, o_ref):
    out = (y_ref[...].astype(jnp.float32) * sc_ref[...] + sh_ref[...]
           + r_ref[...].astype(jnp.float32))
    o_ref[...] = jnp.maximum(out, 0.0).astype(o_ref.dtype)


def _fused_output(y2, sc2, sh2, res, rsc=None, rsh=None):
    M, Cp = y2.shape
    rows = _pick_rows(M)
    row = pl.BlockSpec((rows, Cp), lambda i: (i, 0))
    vec = pl.BlockSpec((1, Cp), lambda i: (0, 0))
    if rsc is None:
        kern = _bn2_add_identity_relu_kernel
        ins, specs = (y2, sc2, sh2, res), [row, vec, vec, row]
    else:
        kern = _bn2_add_relu_kernel
        ins, specs = (y2, sc2, sh2, res, rsc, rsh), [row, vec, vec, row, vec, vec]
    return pl.pallas_call(
        kern,
        out_shape=jax.ShapeDtypeStruct((M, Cp), jnp.float32),
        grid=(M // rows,),
        in_specs=specs,
        out_specs=row,
        compiler_params=pltpu.CompilerParams(
            dimension_semantics=("parallel",),
            vmem_limit_bytes=VMEM_LIMIT),
    )(*ins)


# ----------------------------------------------------------------------------
# ResidualBlock forward
# ----------------------------------------------------------------------------
def init_residual_block(key, in_channels, out_channels, stride=1):
    k1, k2, k3 = jax.random.split(key, 3)
    params = {
        "w1": 0.1 * jax.random.normal(k1, (out_channels, in_channels, 3, 3), jnp.float32),
        "g1": jnp.ones((out_channels,), jnp.float32),
        "b1": jnp.zeros((out_channels,), jnp.float32),
        "w2": 0.1 * jax.random.normal(k2, (out_channels, out_channels, 3, 3), jnp.float32),
        "g2": jnp.ones((out_channels,), jnp.float32),
        "b2": jnp.zeros((out_channels,), jnp.float32),
    }
    if stride != 1 or in_channels != out_channels:
        params["ws"] = 0.1 * jax.random.normal(k3, (out_channels, in_channels, 1, 1), jnp.float32)
        params["gs"] = jnp.ones((out_channels,), jnp.float32)
        params["bs"] = jnp.zeros((out_channels,), jnp.float32)
    return params


@functools.partial(jax.jit, static_argnames=("stride",))
def residual_block_forward(x_nchw, params, stride=1):
    """x: NCHW float32 -> NCHW float32, matching the PyTorch forward."""
    N, Cin, H, W = x_nchw.shape
    Cout = params["w1"].shape[0]
    Cp = _round_up(Cout, 128)                 # lane-dense output channels
    x = x_nchw.transpose(0, 2, 3, 1)          # NHWC once at the module boundary

    taps3 = tuple((kh, kw) for kh in range(3) for kw in range(3))

    # Shared prep for conv1 and the 1x1 shortcut: the 1x1/stride-s shortcut is
    # exactly the centre tap (1,1) of the same padded / phase-split slabs.
    xs1, OH, OW = _prep_slabs(x, 3, stride, 1)
    M = N * OH * OW

    # ---- conv1 (+ streaming BN1 stats) ----
    y1, st1 = _conv(xs1, _prep_weight(params["w1"], Cp, taps3), taps3, stride, N, OH, OW, Cp)
    sc1, sh1 = _bn_scale_shift(st1, M, params["g1"], params["b1"], Cp)

    # ---- conv2: BN1 + ReLU fused into its input prep (no separate BN kernel) ----
    y1_nhwc = y1.reshape(N, OH, OW, Cp)[..., :Cout]   # no-op slice when Cout % 128 == 0
    xs2, _, _ = _prep_slabs(y1_nhwc, 3, 1, 1,
                            scale=sc1[0, :Cout], shift=sh1[0, :Cout], relu=True)
    y2, st2 = _conv(xs2, _prep_weight(params["w2"], Cp, taps3), taps3, 1, N, OH, OW, Cp)
    sc2, sh2 = _bn_scale_shift(st2, M, params["g2"], params["b2"], Cp)
    y2 = y2.reshape(M, Cp)

    # ---- shortcut + BN2 + residual add + ReLU, fused in one kernel ----
    if "ws" in params:
        ysc, sts = _conv(xs1, _prep_weight(params["ws"], Cp, ((0, 0),)), ((1, 1),),
                         stride, N, OH, OW, Cp)
        rsc, rsh = _bn_scale_shift(sts, M, params["gs"], params["bs"], Cp)
        out = _fused_output(y2, sc2, sh2, ysc.reshape(M, Cp), rsc, rsh)
    else:
        res = x.reshape(N * H * W, Cin)       # stride==1, Cin==Cout here
        if Cin != Cp:
            # Rare non-128-multiple case; TODO(synk): lane-masked in-kernel pad.
            res = jnp.pad(res, ((0, 0), (0, Cp - Cin)))
        out = _fused_output(y2, sc2, sh2, res)

    return out.reshape(N, OH, OW, Cp)[..., :Cout].transpose(0, 3, 1, 2)


# ----------------------------------------------------------------------------
# Pure-JAX f32 reference (PyTorch training-mode semantics)
# ----------------------------------------------------------------------------
def _ref_conv(x, w, stride, pad):
    return jax.lax.conv_general_dilated(
        x, w, (stride, stride), ((pad, pad), (pad, pad)),
        dimension_numbers=("NCHW", "OIHW", "NCHW"))


def _ref_bn(x):
    mu = jnp.mean(x, axis=(0, 2, 3), keepdims=True)
    var = jnp.mean((x - mu) ** 2, axis=(0, 2, 3), keepdims=True)
    return (x - mu) * jax.lax.rsqrt(var + EPS)


def residual_block_reference(x, params, stride=1):
    out = jnp.maximum(_ref_bn(_ref_conv(x, params["w1"], stride, 1)), 0.0)
    out = _ref_bn(_ref_conv(out, params["w2"], 1, 1))
    if "ws" in params:
        sc = _ref_bn(_ref_conv(x, params["ws"], stride, 0))
    else:
        sc = x
    return jnp.maximum(out + sc, 0.0)


# ----------------------------------------------------------------------------
if __name__ == "__main__":
    key = jax.random.PRNGKey(0)
    kx, kp1, kp2 = jax.random.split(key, 3)

    # Case 1: downsampling block, exercises the 1x1-conv + BN shortcut path.
    N, Cin, H, W, Cout, stride = 2, 4, 16, 16, 8, 2
    x = jax.random.normal(kx, (N, Cin, H, W), jnp.float32)
    params = init_residual_block(kp1, Cin, Cout, stride)
    out = jax.block_until_ready(residual_block_forward(x, params, stride=stride))
    ref = residual_block_reference(x, params, stride)
    assert out.shape == ref.shape == (N, Cout, H // stride, W // stride), out.shape
    # Tolerance covers bf16 MXU operands / bf16 intermediate slabs (f32 accum,
    # f32 BN math) vs. the pure-f32 reference; real bugs give errors O(1).
    assert jnp.allclose(out, ref, rtol=5e-2, atol=5e-2), float(jnp.max(jnp.abs(out - ref)))

    # Case 2: identity-shortcut block (stride=1, in_channels == out_channels).
    params2 = init_residual_block(kp2, 8, 8, 1)
    x2 = jax.random.normal(kx, (2, 8, 16, 16), jnp.float32)
    out2 = jax.block_until_ready(residual_block_forward(x2, params2, stride=1))
    ref2 = residual_block_reference(x2, params2, 1)
    assert out2.shape == ref2.shape == (2, 8, 16, 16), out2.shape
    assert jnp.allclose(out2, ref2, rtol=5e-2, atol=5e-2), float(jnp.max(jnp.abs(out2 - ref2)))

    print("KERNEL_OK")
</pallas_src>

<mosaic_0001>
module attributes {stable_mosaic.version = 11 : i64} {
  func.func @_conv_kernel(%arg0: i32, %arg1: i32, %arg2: memref<6x1x72x4xbf16, #tpu.memory_space<vmem>>, %arg3: memref<1x4x128xbf16, #tpu.memory_space<vmem>>, %arg4: memref<1x64x128xbf16, #tpu.memory_space<vmem>>, %arg5: memref<1x1x2x128xf32, #tpu.memory_space<vmem>>, %arg6: memref<64x128xf32, #tpu.memory_space<vmem>>) attributes {dimension_semantics = [#tpu.dimension_semantics<parallel>, #tpu.dimension_semantics<arbitrary>], iteration_bounds = array<i64: 2, 1>, scalar_prefetch = 0 : i64, scratch_operands = 1 : i64, tpu.core_type = #tpu.core_type<tc>, window_params = [{transform_indices = @transform_0, window_bounds = array<i64: 6, 1, 72, 4>}, {pipeline_mode = #tpu.pipeline_mode<synchronous>, transform_indices = @transform_1, window_bounds = array<i64: 1, 4, 128>}, {transform_indices = @transform_2, window_bounds = array<i64: 1, 64, 128>}, {transform_indices = @transform_3, window_bounds = array<i64: 1, 1, 2, 128>}]} {
    %c8_i32 = arith.constant 8 : i32
    %0 = arith.muli %arg1, %c8_i32 : i32
    %c0_i32 = arith.constant 0 : i32
    %1 = arith.addi %0, %c0_i32 : i32
    %c8_i32_0 = arith.constant 8 : i32
    %2 = arith.muli %1, %c8_i32_0 : i32
    %c3 = arith.constant 3 : index
    %c0 = arith.constant 0 : index
    %3 = arith.index_cast %2 : i32 to index
    %c0_1 = arith.constant 0 : index
    %4 = vector.load %arg2[%c3, %c0, %3, %c0_1] : memref<6x1x72x4xbf16, #tpu.memory_space<vmem>>, vector<1x1x64x4xbf16>
    %5 = vector.shape_cast %4 : vector<1x1x64x4xbf16> to vector<64x4xbf16>
    %c0_2 = arith.constant 0 : index
    %c0_3 = arith.constant 0 : index
    %c0_4 = arith.constant 0 : index
    %6 = vector.load %arg3[%c0_2, %c0_3, %c0_4] : memref<1x4x128xbf16, #tpu.memory_space<vmem>>, vector<1x4x128xbf16>
    %7 = vector.shape_cast %6 : vector<1x4x128xbf16> to vector<4x128xbf16>
    %cst = arith.constant dense<0.000000e+00> : vector<64x128xf32>
    %8 = tpu.matmul %5, %7, %cst {dimension_numbers = #tpu.dot_dimension_numbers<[1], [0], [0], [1], [0, 0, 1, 1], [], []>} : vector<64x4xbf16>, vector<4x128xbf16>, vector<64x128xf32> -> vector<64x128xf32>
    %c0_5 = arith.constant 0 : index
    %c0_6 = arith.constant 0 : index
    %9 = vector.load %arg6[%c0_5, %c0_6] : memref<64x128xf32, #tpu.memory_space<vmem>>, vector<64x128xf32>
    tpu.vector_store %arg6[%c0_5, %c0_6], %8 {strides = array<i32>} : memref<64x128xf32, #tpu.memory_space<vmem>>, vector<64x128xf32>,
    %c0_7 = arith.constant 0 : index
    %c0_8 = arith.constant 0 : index
    %10 = vector.load %arg6[%c0_7, %c0_8] : memref<64x128xf32, #tpu.memory_space<vmem>>, vector<64x128xf32>
    %11 = arith.truncf %10 : vector<64x128xf32> to vector<64x128xbf16>
    %c0_9 = arith.constant 0 : index
    %c0_10 = arith.constant 0 : index
    %c0_11 = arith.constant 0 : index
    %12 = vector.load %arg4[%c0_9, %c0_10, %c0_11] : memref<1x64x128xbf16, #tpu.memory_space<vmem>>, vector<1x64x128xbf16>
    %13 = vector.shape_cast %12 : vector<1x64x128xbf16> to vector<64x128xbf16>
    %14 = vector.shape_cast %11 : vector<64x128xbf16> to vector<1x64x128xbf16>
    tpu.vector_store %arg4[%c0_9, %c0_10, %c0_11], %14 {strides = array<i32>} : memref<1x64x128xbf16, #tpu.memory_space<vmem>>, vector<1x64x128xbf16>,
    %cst_12 = arith.constant dense<0.000000e+00> : vector<128xf32>
    %15 = vector.multi_reduction <add>, %10, %cst_12 [0] : vector<64x128xf32> to vector<128xf32>
    %16 = vector.shape_cast %15 : vector<128xf32> to vector<1x128xf32>
    %17 = arith.mulf %10, %10 : vector<64x128xf32>
    %cst_13 = arith.constant dense<0.000000e+00> : vector<128xf32>
    %18 = vector.multi_reduction <add>, %17, %cst_13 [0] : vector<64x128xf32> to vector<128xf32>
    %19 = vector.shape_cast %18 : vector<128xf32> to vector<1x128xf32>
    %20 = tpu.concatenate %16, %19 in 0 : vector<1x128xf32>, vector<1x128xf32> -> vector<2x128xf32>
    %c0_14 = arith.constant 0 : index
    %c0_15 = arith.constant 0 : index
    %c0_16 = arith.constant 0 : index
    %c0_17 = arith.constant 0 : index
    %21 = vector.load %arg5[%c0_14, %c0_15, %c0_16, %c0_17] : memref<1x1x2x128xf32, #tpu.memory_space<vmem>>, vector<1x1x2x128xf32>
    %22 = vector.shape_cast %21 : vector<1x1x2x128xf32> to vector<2x128xf32>
    %23 = vector.shape_cast %20 : vector<2x128xf32> to vector<1x1x2x128xf32>
    tpu.vector_store %arg5[%c0_14, %c0_15, %c0_16, %c0_17], %23 {strides = array<i32>} : memref<1x1x2x128xf32, #tpu.memory_space<vmem>>, vector<1x1x2x128xf32>,
    return
  }
  func.func @transform_0(%arg0: i32, %arg1: i32) -> (i32, i32, i32, i32) {
    %c0_i32 = arith.constant 0 : i32
    %c0_i32_0 = arith.constant 0 : i32
    %c0_i32_1 = arith.constant 0 : i32
    %c0_i32_2 = arith.constant 0 : i32
    return %c0_i32, %arg0, %c0_i32_0, %c0_i32_1 : i32, i32, i32, i32
  }
  func.func @transform_1(%arg0: i32, %arg1: i32) -> (i32, i32, i32) {
    %c0_i32 = arith.constant 0 : i32
    %c0_i32_0 = arith.constant 0 : i32
    %c0_i32_1 = arith.constant 0 : i32
    %c0_i32_2 = arith.constant 0 : i32
    return %c0_i32, %c0_i32_0, %c0_i32_1 : i32, i32, i32
  }
  func.func @transform_2(%arg0: i32, %arg1: i32) -> (i32, i32, i32) {
    %c0_i32 = arith.constant 0 : i32
    %c0_i32_0 = arith.constant 0 : i32
    return %arg0, %arg1, %c0_i32 : i32, i32, i32
  }
  func.func @transform_3(%arg0: i32, %arg1: i32) -> (i32, i32, i32, i32) {
    %c0_i32 = arith.constant 0 : i32
    %c0_i32_0 = arith.constant 0 : i32
    %c0_i32_1 = arith.constant 0 : i32
    return %arg0, %arg1, %c0_i32, %c0_i32_0 : i32, i32, i32, i32
  }
}

module attributes {stable_mosaic.version = 11 : i64} {
  func.func @_conv_kernel(%arg0: i32, %arg1: i32, %arg2: memref<6x1x72x4xbf16, #tpu.memory_space<vmem>>, %arg3: memref<9x4x128xbf16, #tpu.memory_space<vmem>>, %arg4: memref<1x64x128xbf16, #tpu.memory_space<vmem>>, %arg5: memref<1x1x2x128xf32, #tpu.memory_space<vmem>>, %arg6: memref<64x128xf32, #tpu.memory_space<vmem>>) attributes {dimension_semantics = [#tpu.dimension_semantics<parallel>, #tpu.dimension_semantics<arbitrary>], iteration_bounds = array<i64: 2, 1>, scalar_prefetch = 0 : i64, scratch_operands = 1 : i64, tpu.core_type = #tpu.core_type<tc>, window_params = [{transform_indices = @transform_0, window_bounds = array<i64: 6, 1, 72, 4>}, {pipeline_mode = #tpu.pipeline_mode<synchronous>, transform_indices = @transform_1, window_bounds = array<i64: 9, 4, 128>}, {transform_indices = @transform_2, window_bounds = array<i64: 1, 64, 128>}, {transform_indices = @transform_3, window_bounds = array<i64: 1, 1, 2, 128>}]} {
    %c8_i32 = arith.constant 8 : i32
    %0 = arith.muli %arg1, %c8_i32 : i32
    %c0_i32 = arith.constant 0 : i32
    %1 = arith.addi %0, %c0_i32 : i32
    %c8_i32_0 = arith.constant 8 : i32
    %2 = arith.muli %1, %c8_i32_0 : i32
    %c0 = arith.constant 0 : index
    %c0_1 = arith.constant 0 : index
    %3 = arith.index_cast %2 : i32 to index
    %c0_2 = arith.constant 0 : index
    %4 = vector.load %arg2[%c0, %c0_1, %3, %c0_2] : memref<6x1x72x4xbf16, #tpu.memory_space<vmem>>, vector<1x1x64x4xbf16>
    %5 = vector.shape_cast %4 : vector<1x1x64x4xbf16> to vector<64x4xbf16>
    %c0_3 = arith.constant 0 : index
    %c0_4 = arith.constant 0 : index
    %c0_5 = arith.constant 0 : index
    %6 = vector.load %arg3[%c0_3, %c0_4, %c0_5] : memref<9x4x128xbf16, #tpu.memory_space<vmem>>, vector<1x4x128xbf16>
    %7 = vector.shape_cast %6 : vector<1x4x128xbf16> to vector<4x128xbf16>
    %cst = arith.constant dense<0.000000e+00> : vector<64x128xf32>
    %8 = tpu.matmul %5, %7, %cst {dimension_numbers = #tpu.dot_dimension_numbers<[1], [0], [0], [1], [0, 0, 1, 1], [], []>} : vector<64x4xbf16>, vector<4x128xbf16>, vector<64x128xf32> -> vector<64x128xf32>
    %c0_6 = arith.constant 0 : index
    %c0_7 = arith.constant 0 : index
    %9 = vector.load %arg6[%c0_6, %c0_7] : memref<64x128xf32, #tpu.memory_space<vmem>>, vector<64x128xf32>
    tpu.vector_store %arg6[%c0_6, %c0_7], %8 {strides = array<i32>} : memref<64x128xf32, #tpu.memory_space<vmem>>, vector<64x128xf32>,
    %c8_i32_8 = arith.constant 8 : i32
    %10 = arith.muli %arg1, %c8_i32_8 : i32
    %c0_i32_9 = arith.constant 0 : i32
    %11 = arith.addi %10, %c0_i32_9 : i32
    %c8_i32_10 = arith.constant 8 : i32
    %12 = arith.muli %11, %c8_i32_10 : i32
    %c2 = arith.constant 2 : index
    %c0_11 = arith.constant 0 : index
    %13 = arith.index_cast %12 : i32 to index
    %c0_12 = arith.constant 0 : index
    %14 = vector.load %arg2[%c2, %c0_11, %13, %c0_12] : memref<6x1x72x4xbf16, #tpu.memory_space<vmem>>, vector<1x1x64x4xbf16>
    %15 = vector.shape_cast %14 : vector<1x1x64x4xbf16> to vector<64x4xbf16>
    %c1 = arith.constant 1 : index
    %c0_13 = arith.constant 0 : index
    %c0_14 = arith.constant 0 : index
    %16 = vector.load %arg3[%c1, %c0_13, %c0_14] : memref<9x4x128xbf16, #tpu.memory_space<vmem>>, vector<1x4x128xbf16>
    %17 = vector.shape_cast %16 : vector<1x4x128xbf16> to vector<4x128xbf16>
    %cst_15 = arith.constant dense<0.000000e+00> : vector<64x128xf32>
    %18 = tpu.matmul %15, %17, %cst_15 {dimension_numbers = #tpu.dot_dimension_numbers<[1], [0], [0], [1], [0, 0, 1, 1], [], []>} : vector<64x4xbf16>, vector<4x128xbf16>, vector<64x128xf32> -> vector<64x128xf32>
    %c0_16 = arith.constant 0 : index
    %c0_17 = arith.constant 0 : index
    %19 = vector.load %arg6[%c0_16, %c0_17] : memref<64x128xf32, #tpu.memory_space<vmem>>, vector<64x128xf32>
    %20 = arith.addf %19, %18 : vector<64x128xf32>
    %c0_18 = arith.constant 0 : index
    %c0_19 = arith.constant 0 : index
    %21 = vector.load %arg6[%c0_18, %c0_19] : memref<64x128xf32, #tpu.memory_space<vmem>>, vector<64x128xf32>
    tpu.vector_store %arg6[%c0_18, %c0_19], %20 {strides = array<i32>} : memref<64x128xf32, #tpu.memory_space<vmem>>, vector<64x128xf32>,
    %c8_i32_20 = arith.constant 8 : i32
    %22 = arith.muli %arg1, %c8_i32_20 : i32
    %c0_i32_21 = arith.constant 0 : i32
    %23 = arith.addi %22, %c0_i32_21 : i32
    %c8_i32_22 = arith.constant 8 : i32
    %24 = arith.muli %23, %c8_i32_22 : i32
    %c4 = arith.constant 4 : index
    %c0_23 = arith.constant 0 : index
    %25 = arith.index_cast %24 : i32 to index
    %c0_24 = arith.constant 0 : index
    %26 = vector.load %arg2[%c4, %c0_23, %25, %c0_24] : memref<6x1x72x4xbf16, #tpu.memory_space<vmem>>, vector<1x1x64x4xbf16>
    %27 = vector.shape_cast %26 : vector<1x1x64x4xbf16> to vector<64x4xbf16>
    %c2_25 = arith.constant 2 : index
    %c0_26 = arith.constant 0 : index
    %c0_27 = arith.constant 0 : index
    %28 = vector.load %arg3[%c2_25, %c0_26, %c0_27] : memref<9x4x128xbf16, #tpu.memory_space<vmem>>, vector<1x4x128xbf16>
    %29 = vector.shape_cast %28 : vector<1x4x128xbf16> to vector<4x128xbf16>
    %cst_28 = arith.constant dense<0.000000e+00> : vector<64x128xf32>
    %30 = tpu.matmul %27, %29, %cst_28 {dimension_numbers = #tpu.dot_dimension_numbers<[1], [0], [0], [1], [0, 0, 1, 1], [], []>} : vector<64x4xbf16>, vector<4x128xbf16>, vector<64x128xf32> -> vector<64x128xf32>
    %c0_29 = arith.constant 0 : index
    %c0_30 = arith.constant 0 : index
    %31 = vector.load %arg6[%c0_29, %c0_30] : memref<64x128xf32, #tpu.memory_space<vmem>>, vector<64x128xf32>
    %32 = arith.addf %31, %30 : vector<64x128xf32>
    %c0_31 = arith.constant 0 : index
    %c0_32 = arith.constant 0 : index
    %33 = vector.load %arg6[%c0_31, %c0_32] : memref<64x128xf32, #tpu.memory_space<vmem>>, vector<64x128xf32>
    tpu.vector_store %arg6[%c0_31, %c0_32], %32 {strides = array<i32>} : memref<64x128xf32, #tpu.memory_space<vmem>>, vector<64x128xf32>,
    %c8_i32_33 = arith.constant 8 : i32
    %34 = arith.muli %arg1, %c8_i32_33 : i32
    %c0_i32_34 = arith.constant 0 : i32
    %35 = arith.addi %34, %c0_i32_34 : i32
    %c8_i32_35 = arith.constant 8 : i32
    %36 = arith.muli %35, %c8_i32_35 : i32
    %c1_36 = arith.constant 1 : index
    %c0_37 = arith.constant 0 : index
    %37 = arith.index_cast %36 : i32 to index
    %c0_38 = arith.constant 0 : index
    %38 = vector.load %arg2[%c1_36, %c0_37, %37, %c0_38] : memref<6x1x72x4xbf16, #tpu.memory_space<vmem>>, vector<1x1x64x4xbf16>
    %39 = vector.shape_cast %38 : vector<1x1x64x4xbf16> to vector<64x4xbf16>
    %c3 = arith.constant 3 : index
    %c0_39 = arith.constant 0 : index
    %c0_40 = arith.constant 0 : index
    %40 = vector.load %arg3[%c3, %c0_39, %c0_40] : memref<9x4x128xbf16, #tpu.memory_space<vmem>>, vector<1x4x128xbf16>
    %41 = vector.shape_cast %40 : vector<1x4x128xbf16> to vector<4x128xbf16>
    %cst_41 = arith.constant dense<0.000000e+00> : vector<64x128xf32>
    %42 = tpu.matmul %39, %41, %cst_41 {dimension_numbers = #tpu.dot_dimension_numbers<[1], [0], [0], [1], [0, 0, 1, 1], [], []>} : vector<64x4xbf16>, vector<4x128xbf16>, vector<64x128xf32> -> vector<64x128xf32>
    %c0_42 = arith.constant 0 : index
    %c0_43 = arith.constant 0 : index
    %43 = vector.load %arg6[%c0_42, %c0_43] : memref<64x128xf32, #tpu.memory_space<vmem>>, vector<64x128xf32>
    %44 = arith.addf %43, %42 : vector<64x128xf32>
    %c0_44 = arith.constant 0 : index
    %c0_45 = arith.constant 0 : index
    %45 = vector.load %arg6[%c0_44, %c0_45] : memref<64x128xf32, #tpu.memory_space<vmem>>, vector<64x128xf32>
    tpu.vector_store %arg6[%c0_44, %c0_45], %44 {strides = array<i32>} : memref<64x128xf32, #tpu.memory_space<vmem>>, vector<64x128xf32>,
    %c8_i32_46 = arith.constant 8 : i32
    %46 = arith.muli %arg1, %c8_i32_46 : i32
    %c0_i32_47 = arith.constant 0 : i32
    %47 = arith.addi %46, %c0_i32_47 : i32
    %c8_i32_48 = arith.constant 8 : i32
    %48 = arith.muli %47, %c8_i32_48 : i32
    %c3_49 = arith.constant 3 : index
    %c0_50 = arith.constant 0 : index
    %49 = arith.index_cast %48 : i32 to index
    %c0_51 = arith.constant 0 : index
    %50 = vector.load %arg2[%c3_49, %c0_50, %49, %c0_51] : memref<6x1x72x4xbf16, #tpu.memory_space<vmem>>, vector<1x1x64x4xbf16>
    %51 = vector.shape_cast %50 : vector<1x1x64x4xbf16> to vector<64x4xbf16>
    %c4_52 = arith.constant 4 : index
    %c0_53 = arith.constant 0 : index
    %c0_54 = arith.constant 0 : index
    %52 = vector.load %arg3[%c4_52, %c0_53, %c0_54] : memref<9x4x128xbf16, #tpu.memory_space<vmem>>, vector<1x4x128xbf16>
    %53 = vector.shape_cast %52 : vector<1x4x128xbf16> to vector<4x128xbf16>
    %cst_55 = arith.constant dense<0.000000e+00> : vector<64x128xf32>
    %54 = tpu.matmul %51, %53, %cst_55 {dimension_numbers = #tpu.dot_dimension_numbers<[1], [0], [0], [1], [0, 0, 1, 1], [], []>} : vector<64x4xbf16>, vector<4x128xbf16>, vector<64x128xf32> -> vector<64x128xf32>
    %c0_56 = arith.constant 0 : index
    %c0_57 = arith.constant 0 : index
    %55 = vector.load %arg6[%c0_56, %c0_57] : memref<64x128xf32, #tpu.memory_space<vmem>>, vector<64x128xf32>
    %56 = arith.addf %55, %54 : vector<64x128xf32>
    %c0_58 = arith.constant 0 : index
    %c0_59 = arith.constant 0 : index
    %57 = vector.load %arg6[%c0_58, %c0_59] : memref<64x128xf32, #tpu.memory_space<vmem>>, vector<64x128xf32>
    tpu.vector_store %arg6[%c0_58, %c0_59], %56 {strides = array<i32>} : memref<64x128xf32, #tpu.memory_space<vmem>>, vector<64x128xf32>,
    %c8_i32_60 = arith.constant 8 : i32
    %58 = arith.muli %arg1, %c8_i32_60 : i32
    %c0_i32_61 = arith.constant 0 : i32
    %59 = arith.addi %58, %c0_i32_61 : i32
    %c8_i32_62 = arith.constant 8 : i32
    %60 = arith.muli %59, %c8_i32_62 : i32
    %c5 = arith.constant 5 : index
    %c0_63 = arith.constant 0 : index
    %61 = arith.index_cast %60 : i32 to index
    %c0_64 = arith.constant 0 : index
    %62 = vector.load %arg2[%c5, %c0_63, %61, %c0_64] : memref<6x1x72x4xbf16, #tpu.memory_space<vmem>>, vector<1x1x64x4xbf16>
    %63 = vector.shape_cast %62 : vector<1x1x64x4xbf16> to vector<64x4xbf16>
    %c5_65 = arith.constant 5 : index
    %c0_66 = arith.constant 0 : index
    %c0_67 = arith.constant 0 : index
    %64 = vector.load %arg3[%c5_65, %c0_66, %c0_67] : memref<9x4x128xbf16, #tpu.memory_space<vmem>>, vector<1x4x128xbf16>
    %65 = vector.shape_cast %64 : vector<1x4x128xbf16> to vector<4x128xbf16>
    %cst_68 = arith.constant dense<0.000000e+00> : vector<64x128xf32>
    %66 = tpu.matmul %63, %65, %cst_68 {dimension_numbers = #tpu.dot_dimension_numbers<[1], [0], [0], [1], [0, 0, 1, 1], [], []>} : vector<64x4xbf16>, vector<4x128xbf16>, vector<64x128xf32> -> vector<64x128xf32>
    %c0_69 = arith.constant 0 : index
    %c0_70 = arith.constant 0 : index
    %67 = vector.load %arg6[%c0_69, %c0_70] : memref<64x128xf32, #tpu.memory_space<vmem>>, vector<64x128xf32>
    %68 = arith.addf %67, %66 : vector<64x128xf32>
    %c0_71 = arith.constant 0 : index
    %c0_72 = arith.constant 0 : index
    %69 = vector.load %arg6[%c0_71, %c0_72] : memref<64x128xf32, #tpu.memory_space<vmem>>, vector<64x128xf32>
    tpu.vector_store %arg6[%c0_71, %c0_72], %68 {strides = array<i32>} : memref<64x128xf32, #tpu.memory_space<vmem>>, vector<64x128xf32>,
    %c8_i32_73 = arith.constant 8 : i32
    %70 = arith.muli %arg1, %c8_i32_73 : i32
    %c1_i32 = arith.constant 1 : i32
    %71 = arith.addi %70, %c1_i32 : i32
    %c8_i32_74 = arith.constant 8 : i32
    %72 = arith.muli %71, %c8_i32_74 : i32
    %c0_75 = arith.constant 0 : index
    %c0_76 = arith.constant 0 : index
    %73 = arith.index_cast %72 : i32 to index
    %c0_77 = arith.constant 0 : index
    %74 = vector.load %arg2[%c0_75, %c0_76, %73, %c0_77] : memref<6x1x72x4xbf16, #tpu.memory_space<vmem>>, vector<1x1x64x4xbf16>
    %75 = vector.shape_cast %74 : vector<1x1x64x4xbf16> to vector<64x4xbf16>
    %c6 = arith.constant 6 : index
    %c0_78 = arith.constant 0 : index
    %c0_79 = arith.constant 0 : index
    %76 = vector.load %arg3[%c6, %c0_78, %c0_79] : memref<9x4x128xbf16, #tpu.memory_space<vmem>>, vector<1x4x128xbf16>
    %77 = vector.shape_cast %76 : vector<1x4x128xbf16> to vector<4x128xbf16>
    %cst_80 = arith.constant dense<0.000000e+00> : vector<64x128xf32>
    %78 = tpu.matmul %75, %77, %cst_80 {dimension_numbers = #tpu.dot_dimension_numbers<[1], [0], [0], [1], [0, 0, 1, 1], [], []>} : vector<64x4xbf16>, vector<4x128xbf16>, vector<64x128xf32> -> vector<64x128xf32>
    %c0_81 = arith.constant 0 : index
    %c0_82 = arith.constant 0 : index
    %79 = vector.load %arg6[%c0_81, %c0_82] : memref<64x128xf32, #tpu.memory_space<vmem>>, vector<64x128xf32>
    %80 = arith.addf %79, %78 : vector<64x128xf32>
    %c0_83 = arith.constant 0 : index
    %c0_84 = arith.constant 0 : index
    %81 = vector.load %arg6[%c0_83, %c0_84] : memref<64x128xf32, #tpu.memory_space<vmem>>, vector<64x128xf32>
    tpu.vector_store %arg6[%c0_83, %c0_84], %80 {strides = array<i32>} : memref<64x128xf32, #tpu.memory_space<vmem>>, vector<64x128xf32>,
    %c8_i32_85 = arith.constant 8 : i32
    %82 = arith.muli %arg1, %c8_i32_85 : i32
    %c1_i32_86 = arith.constant 1 : i32
    %83 = arith.addi %82, %c1_i32_86 : i32
    %c8_i32_87 = arith.constant 8 : i32
    %84 = arith.muli %83, %c8_i32_87 : i32
    %c2_88 = arith.constant 2 : index
    %c0_89 = arith.constant 0 : index
    %85 = arith.index_cast %84 : i32 to index
    %c0_90 = arith.constant 0 : index
    %86 = vector.load %arg2[%c2_88, %c0_89, %85, %c0_90] : memref<6x1x72x4xbf16, #tpu.memory_space<vmem>>, vector<1x1x64x4xbf16>
    %87 = vector.shape_cast %86 : vector<1x1x64x4xbf16> to vector<64x4xbf16>
    %c7 = arith.constant 7 : index
    %c0_91 = arith.constant 0 : index
    %c0_92 = arith.constant 0 : index
    %88 = vector.load %arg3[%c7, %c0_91, %c0_92] : memref<9x4x128xbf16, #tpu.memory_space<vmem>>, vector<1x4x128xbf16>
    %89 = vector.shape_cast %88 : vector<1x4x128xbf16> to vector<4x128xbf16>
    %cst_93 = arith.constant dense<0.000000e+00> : vector<64x128xf32>
    %90 = tpu.matmul %87, %89, %cst_93 {dimension_numbers = #tpu.dot_dimension_numbers<[1], [0], [0], [1], [0, 0, 1, 1], [], []>} : vector<64x4xbf16>, vector<4x128xbf16>, vector<64x128xf32> -> vector<64x128xf32>
    %c0_94 = arith.constant 0 : index
    %c0_95 = arith.constant 0 : index
    %91 = vector.load %arg6[%c0_94, %c0_95] : memref<64x128xf32, #tpu.memory_space<vmem>>, vector<64x128xf32>
    %92 = arith.addf %91, %90 : vector<64x128xf32>
    %c0_96 = arith.constant 0 : index
    %c0_97 = arith.constant 0 : index
    %93 = vector.load %arg6[%c0_96, %c0_97] : memref<64x128xf32, #tpu.memory_space<vmem>>, vector<64x128xf32>
    tpu.vector_store %arg6[%c0_96, %c0_97], %92 {strides = array<i32>} : memref<64x128xf32, #tpu.memory_space<vmem>>, vector<64x128xf32>,
    %c8_i32_98 = arith.constant 8 : i32
    %94 = arith.muli %arg1, %c8_i32_98 : i32
    %c1_i32_99 = arith.constant 1 : i32
    %95 = arith.addi %94, %c1_i32_99 : i32
    %c8_i32_100 = arith.constant 8 : i32
    %96 = arith.muli %95, %c8_i32_100 : i32
    %c4_101 = arith.constant 4 : index
    %c0_102 = arith.constant 0 : index
    %97 = arith.index_cast %96 : i32 to index
    %c0_103 = arith.constant 0 : index
    %98 = vector.load %arg2[%c4_101, %c0_102, %97, %c0_103] : memref<6x1x72x4xbf16, #tpu.memory_space<vmem>>, vector<1x1x64x4xbf16>
    %99 = vector.shape_cast %98 : vector<1x1x64x4xbf16> to vector<64x4xbf16>
    %c8 = arith.constant 8 : index
    %c0_104 = arith.constant 0 : index
    %c0_105 = arith.constant 0 : index
    %100 = vector.load %arg3[%c8, %c0_104, %c0_105] : memref<9x4x128xbf16, #tpu.memory_space<vmem>>, vector<1x4x128xbf16>
    %101 = vector.shape_cast %100 : vector<1x4x128xbf16> to vector<4x128xbf16>
    %cst_106 = arith.constant dense<0.000000e+00> : vector<64x128xf32>
    %102 = tpu.matmul %99, %101, %cst_106 {dimension_numbers = #tpu.dot_dimension_numbers<[1], [0], [0], [1], [0, 0, 1, 1], [], []>} : vector<64x4xbf16>, vector<4x128xbf16>, vector<64x128xf32> -> vector<64x128xf32>
    %c0_107 = arith.constant 0 : index
    %c0_108 = arith.constant 0 : index
    %103 = vector.load %arg6[%c0_107, %c0_108] : memref<64x128xf32, #tpu.memory_space<vmem>>, vector<64x128xf32>
    %104 = arith.addf %103, %102 : vector<64x128xf32>
    %c0_109 = arith.constant 0 : index
    %c0_110 = arith.constant 0 : index
    %105 = vector.load %arg6[%c0_109, %c0_110] : memref<64x128xf32, #tpu.memory_space<vmem>>, vector<64x128xf32>
    tpu.vector_store %arg6[%c0_109, %c0_110], %104 {strides = array<i32>} : memref<64x128xf32, #tpu.memory_space<vmem>>, vector<64x128xf32>,
    %c0_111 = arith.constant 0 : index
    %c0_112 = arith.constant 0 : index
    %106 = vector.load %arg6[%c0_111, %c0_112] : memref<64x128xf32, #tpu.memory_space<vmem>>, vector<64x128xf32>
    %107 = arith.truncf %106 : vector<64x128xf32> to vector<64x128xbf16>
    %c0_113 = arith.constant 0 : index
    %c0_114 = arith.constant 0 : index
    %c0_115 = arith.constant 0 : index
    %108 = vector.load %arg4[%c0_113, %c0_114, %c0_115] : memref<1x64x128xbf16, #tpu.memory_space<vmem>>, vector<1x64x128xbf16>
    %109 = vector.shape_cast %108 : vector<1x64x128xbf16> to vector<64x128xbf16>
    %110 = vector.shape_cast %107 : vector<64x128xbf16> to vector<1x64x128xbf16>
    tpu.vector_store %arg4[%c0_113, %c0_114, %c0_115], %110 {strides = array<i32>} : memref<1x64x128xbf16, #tpu.memory_space<vmem>>, vector<1x64x128xbf16>,
    %cst_116 = arith.constant dense<0.000000e+00> : vector<128xf32>
    %111 = vector.multi_reduction <add>, %106, %cst_116 [0] : vector<64x128xf32> to vector<128xf32>
    %112 = vector.shape_cast %111 : vector<128xf32> to vector<1x128xf32>
    %113 = arith.mulf %106, %106 : vector<64x128xf32>
    %cst_117 = arith.constant dense<0.000000e+00> : vector<128xf32>
    %114 = vector.multi_reduction <add>, %113, %cst_117 [0] : vector<64x128xf32> to vector<128xf32>
    %115 = vector.shape_cast %114 : vector<128xf32> to vector<1x128xf32>
    %116 = tpu.concatenate %112, %115 in 0 : vector<1x128xf32>, vector<1x128xf32> -> vector<2x128xf32>
    %c0_118 = arith.constant 0 : index
    %c0_119 = arith.constant 0 : index
    %c0_120 = arith.constant 0 : index
    %c0_121 = arith.constant 0 : index
    %117 = vector.load %arg5[%c0_118, %c0_119, %c0_120, %c0_121] : memref<1x1x2x128xf32, #tpu.memory_space<vmem>>, vector<1x1x2x128xf32>
    %118 = vector.shape_cast %117 : vector<1x1x2x128xf32> to vector<2x128xf32>
    %119 = vector.shape_cast %116 : vector<2x128xf32> to vector<1x1x2x128xf32>
    tpu.vector_store %arg5[%c0_118, %c0_119, %c0_120, %c0_121], %119 {strides = array<i32>} : memref<1x1x2x128xf32, #tpu.memory_space<vmem>>, vector<1x1x2x128xf32>,
    return
  }
  func.func @transform_0(%arg0: i32, %arg1: i32) -> (i32, i32, i32, i32) {
    %c0_i32 = arith.constant 0 : i32
    %c0_i32_0 = arith.constant 0 : i32
    %c0_i32_1 = arith.constant 0 : i32
    %c0_i32_2 = arith.constant 0 : i32
    return %c0_i32, %arg0, %c0_i32_0, %c0_i32_1 : i32, i32, i32, i32
  }
  func.func @transform_1(%arg0: i32, %arg1: i32) -> (i32, i32, i32) {
    %c0_i32 = arith.constant 0 : i32
    %c0_i32_0 = arith.constant 0 : i32
    %c0_i32_1 = arith.constant 0 : i32
    %c0_i32_2 = arith.constant 0 : i32
    return %c0_i32, %c0_i32_0, %c0_i32_1 : i32, i32, i32
  }
  func.func @transform_2(%arg0: i32, %arg1: i32) -> (i32, i32, i32) {
    %c0_i32 = arith.constant 0 : i32
    %c0_i32_0 = arith.constant 0 : i32
    return %arg0, %arg1, %c0_i32 : i32, i32, i32
  }
  func.func @transform_3(%arg0: i32, %arg1: i32) -> (i32, i32, i32, i32) {
    %c0_i32 = arith.constant 0 : i32
    %c0_i32_0 = arith.constant 0 : i32
    %c0_i32_1 = arith.constant 0 : i32
    return %arg0, %arg1, %c0_i32, %c0_i32_0 : i32, i32, i32, i32
  }
}

module attributes {stable_mosaic.version = 11 : i64} {
  func.func @_conv_kernel(%arg0: i32, %arg1: i32, %arg2: memref<3x1x80x8xbf16, #tpu.memory_space<vmem>>, %arg3: memref<9x8x128xbf16, #tpu.memory_space<vmem>>, %arg4: memref<1x64x128xbf16, #tpu.memory_space<vmem>>, %arg5: memref<1x1x2x128xf32, #tpu.memory_space<vmem>>, %arg6: memref<64x128xf32, #tpu.memory_space<vmem>>) attributes {dimension_semantics = [#tpu.dimension_semantics<parallel>, #tpu.dimension_semantics<arbitrary>], iteration_bounds = array<i64: 2, 1>, scalar_prefetch = 0 : i64, scratch_operands = 1 : i64, tpu.core_type = #tpu.core_type<tc>, window_params = [{transform_indices = @transform_0, window_bounds = array<i64: 3, 1, 80, 8>}, {pipeline_mode = #tpu.pipeline_mode<synchronous>, transform_indices = @transform_1, window_bounds = array<i64: 9, 8, 128>}, {transform_indices = @transform_2, window_bounds = array<i64: 1, 64, 128>}, {transform_indices = @transform_3, window_bounds = array<i64: 1, 1, 2, 128>}]} {
    %c8_i32 = arith.constant 8 : i32
    %0 = arith.muli %arg1, %c8_i32 : i32
    %c0_i32 = arith.constant 0 : i32
    %1 = arith.addi %0, %c0_i32 : i32
    %c8_i32_0 = arith.constant 8 : i32
    %2 = arith.muli %1, %c8_i32_0 : i32
    %c0 = arith.constant 0 : index
    %c0_1 = arith.constant 0 : index
    %3 = arith.index_cast %2 : i32 to index
    %c0_2 = arith.constant 0 : index
    %4 = vector.load %arg2[%c0, %c0_1, %3, %c0_2] : memref<3x1x80x8xbf16, #tpu.memory_space<vmem>>, vector<1x1x64x8xbf16>
    %5 = vector.shape_cast %4 : vector<1x1x64x8xbf16> to vector<64x8xbf16>
    %c0_3 = arith.constant 0 : index
    %c0_4 = arith.constant 0 : index
    %c0_5 = arith.constant 0 : index
    %6 = vector.load %arg3[%c0_3, %c0_4, %c0_5] : memref<9x8x128xbf16, #tpu.memory_space<vmem>>, vector<1x8x128xbf16>
    %7 = vector.shape_cast %6 : vector<1x8x128xbf16> to vector<8x128xbf16>
    %cst = arith.constant dense<0.000000e+00> : vector<64x128xf32>
    %8 = tpu.matmul %5, %7, %cst {dimension_numbers = #tpu.dot_dimension_numbers<[1], [0], [0], [1], [0, 0, 1, 1], [], []>} : vector<64x8xbf16>, vector<8x128xbf16>, vector<64x128xf32> -> vector<64x128xf32>
    %c0_6 = arith.constant 0 : index
    %c0_7 = arith.constant 0 : index
    %9 = vector.load %arg6[%c0_6, %c0_7] : memref<64x128xf32, #tpu.memory_space<vmem>>, vector<64x128xf32>
    tpu.vector_store %arg6[%c0_6, %c0_7], %8 {strides = array<i32>} : memref<64x128xf32, #tpu.memory_space<vmem>>, vector<64x128xf32>,
    %c8_i32_8 = arith.constant 8 : i32
    %10 = arith.muli %arg1, %c8_i32_8 : i32
    %c0_i32_9 = arith.constant 0 : i32
    %11 = arith.addi %10, %c0_i32_9 : i32
    %c8_i32_10 = arith.constant 8 : i32
    %12 = arith.muli %11, %c8_i32_10 : i32
    %c1 = arith.constant 1 : index
    %c0_11 = arith.constant 0 : index
    %13 = arith.index_cast %12 : i32 to index
    %c0_12 = arith.constant 0 : index
    %14 = vector.load %arg2[%c1, %c0_11, %13, %c0_12] : memref<3x1x80x8xbf16, #tpu.memory_space<vmem>>, vector<1x1x64x8xbf16>
    %15 = vector.shape_cast %14 : vector<1x1x64x8xbf16> to vector<64x8xbf16>
    %c1_13 = arith.constant 1 : index
    %c0_14 = arith.constant 0 : index
    %c0_15 = arith.constant 0 : index
    %16 = vector.load %arg3[%c1_13, %c0_14, %c0_15] : memref<9x8x128xbf16, #tpu.memory_space<vmem>>, vector<1x8x128xbf16>
    %17 = vector.shape_cast %16 : vector<1x8x128xbf16> to vector<8x128xbf16>
    %cst_16 = arith.constant dense<0.000000e+00> : vector<64x128xf32>
    %18 = tpu.matmul %15, %17, %cst_16 {dimension_numbers = #tpu.dot_dimension_numbers<[1], [0], [0], [1], [0, 0, 1, 1], [], []>} : vector<64x8xbf16>, vector<8x128xbf16>, vector<64x128xf32> -> vector<64x128xf32>
    %c0_17 = arith.constant 0 : index
    %c0_18 = arith.constant 0 : index
    %19 = vector.load %arg6[%c0_17, %c0_18] : memref<64x128xf32, #tpu.memory_space<vmem>>, vector<64x128xf32>
    %20 = arith.addf %19, %18 : vector<64x128xf32>
    %c0_19 = arith.constant 0 : index
    %c0_20 = arith.constant 0 : index
    %21 = vector.load %arg6[%c0_19, %c0_20] : memref<64x128xf32, #tpu.memory_space<vmem>>, vector<64x128xf32>
    tpu.vector_store %arg6[%c0_19, %c0_20], %20 {strides = array<i32>} : memref<64x128xf32, #tpu.memory_space<vmem>>, vector<64x128xf32>,
    %c8_i32_21 = arith.constant 8 : i32
    %22 = arith.muli %arg1, %c8_i32_21 : i32
    %c0_i32_22 = arith.constant 0 : i32
    %23 = arith.addi %22, %c0_i32_22 : i32
    %c8_i32_23 = arith.constant 8 : i32
    %24 = arith.muli %23, %c8_i32_23 : i32
    %c2 = arith.constant 2 : index
    %c0_24 = arith.constant 0 : index
    %25 = arith.index_cast %24 : i32 to index
    %c0_25 = arith.constant 0 : index
    %26 = vector.load %arg2[%c2, %c0_24, %25, %c0_25] : memref<3x1x80x8xbf16, #tpu.memory_space<vmem>>, vector<1x1x64x8xbf16>
    %27 = vector.shape_cast %26 : vector<1x1x64x8xbf16> to vector<64x8xbf16>
    %c2_26 = arith.constant 2 : index
    %c0_27 = arith.constant 0 : index
    %c0_28 = arith.constant 0 : index
    %28 = vector.load %arg3[%c2_26, %c0_27, %c0_28] : memref<9x8x128xbf16, #tpu.memory_space<vmem>>, vector<1x8x128xbf16>
    %29 = vector.shape_cast %28 : vector<1x8x128xbf16> to vector<8x128xbf16>
    %cst_29 = arith.constant dense<0.000000e+00> : vector<64x128xf32>
    %30 = tpu.matmul %27, %29, %cst_29 {dimension_numbers = #tpu.dot_dimension_numbers<[1], [0], [0], [1], [0, 0, 1, 1], [], []>} : vector<64x8xbf16>, vector<8x128xbf16>, vector<64x128xf32> -> vector<64x128xf32>
    %c0_30 = arith.constant 0 : index
    %c0_31 = arith.constant 0 : index
    %31 = vector.load %arg6[%c0_30, %c0_31] : memref<64x128xf32, #tpu.memory_space<vmem>>, vector<64x128xf32>
    %32 = arith.addf %31, %30 : vector<64x128xf32>
    %c0_32 = arith.constant 0 : index
    %c0_33 = arith.constant 0 : index
    %33 = vector.load %arg6[%c0_32, %c0_33] : memref<64x128xf32, #tpu.memory_space<vmem>>, vector<64x128xf32>
    tpu.vector_store %arg6[%c0_32, %c0_33], %32 {strides = array<i32>} : memref<64x128xf32, #tpu.memory_space<vmem>>, vector<64x128xf32>,
    %c8_i32_34 = arith.constant 8 : i32
    %34 = arith.muli %arg1, %c8_i32_34 : i32
    %c1_i32 = arith.constant 1 : i32
    %35 = arith.addi %34, %c1_i32 : i32
    %c8_i32_35 = arith.constant 8 : i32
    %36 = arith.muli %35, %c8_i32_35 : i32
    %c0_36 = arith.constant 0 : index
    %c0_37 = arith.constant 0 : index
    %37 = arith.index_cast %36 : i32 to index
    %c0_38 = arith.constant 0 : index
    %38 = vector.load %arg2[%c0_36, %c0_37, %37, %c0_38] : memref<3x1x80x8xbf16, #tpu.memory_space<vmem>>, vector<1x1x64x8xbf16>
    %39 = vector.shape_cast %38 : vector<1x1x64x8xbf16> to vector<64x8xbf16>
    %c3 = arith.constant 3 : index
    %c0_39 = arith.constant 0 : index
    %c0_40 = arith.constant 0 : index
    %40 = vector.load %arg3[%c3, %c0_39, %c0_40] : memref<9x8x128xbf16, #tpu.memory_space<vmem>>, vector<1x8x128xbf16>
    %41 = vector.shape_cast %40 : vector<1x8x128xbf16> to vector<8x128xbf16>
    %cst_41 = arith.constant dense<0.000000e+00> : vector<64x128xf32>
    %42 = tpu.matmul %39, %41, %cst_41 {dimension_numbers = #tpu.dot_dimension_numbers<[1], [0], [0], [1], [0, 0, 1, 1], [], []>} : vector<64x8xbf16>, vector<8x128xbf16>, vector<64x128xf32> -> vector<64x128xf32>
    %c0_42 = arith.constant 0 : index
    %c0_43 = arith.constant 0 : index
    %43 = vector.load %arg6[%c0_42, %c0_43] : memref<64x128xf32, #tpu.memory_space<vmem>>, vector<64x128xf32>
    %44 = arith.addf %43, %42 : vector<64x128xf32>
    %c0_44 = arith.constant 0 : index
    %c0_45 = arith.constant 0 : index
    %45 = vector.load %arg6[%c0_44, %c0_45] : memref<64x128xf32, #tpu.memory_space<vmem>>, vector<64x128xf32>
    tpu.vector_store %arg6[%c0_44, %c0_45], %44 {strides = array<i32>} : memref<64x128xf32, #tpu.memory_space<vmem>>, vector<64x128xf32>,
    %c8_i32_46 = arith.constant 8 : i32
    %46 = arith.muli %arg1, %c8_i32_46 : i32
    %c1_i32_47 = arith.constant 1 : i32
    %47 = arith.addi %46, %c1_i32_47 : i32
    %c8_i32_48 = arith.constant 8 : i32
    %48 = arith.muli %47, %c8_i32_48 : i32
    %c1_49 = arith.constant 1 : index
    %c0_50 = arith.constant 0 : index
    %49 = arith.index_cast %48 : i32 to index
    %c0_51 = arith.constant 0 : index
    %50 = vector.load %arg2[%c1_49, %c0_50, %49, %c0_51] : memref<3x1x80x8xbf16, #tpu.memory_space<vmem>>, vector<1x1x64x8xbf16>
    %51 = vector.shape_cast %50 : vector<1x1x64x8xbf16> to vector<64x8xbf16>
    %c4 = arith.constant 4 : index
    %c0_52 = arith.constant 0 : index
    %c0_53 = arith.constant 0 : index
    %52 = vector.load %arg3[%c4, %c0_52, %c0_53] : memref<9x8x128xbf16, #tpu.memory_space<vmem>>, vector<1x8x128xbf16>
    %53 = vector.shape_cast %52 : vector<1x8x128xbf16> to vector<8x128xbf16>
    %cst_54 = arith.constant dense<0.000000e+00> : vector<64x128xf32>
    %54 = tpu.matmul %51, %53, %cst_54 {dimension_numbers = #tpu.dot_dimension_numbers<[1], [0], [0], [1], [0, 0, 1, 1], [], []>} : vector<64x8xbf16>, vector<8x128xbf16>, vector<64x128xf32> -> vector<64x128xf32>
    %c0_55 = arith.constant 0 : index
    %c0_56 = arith.constant 0 : index
    %55 = vector.load %arg6[%c0_55, %c0_56] : memref<64x128xf32, #tpu.memory_space<vmem>>, vector<64x128xf32>
    %56 = arith.addf %55, %54 : vector<64x128xf32>
    %c0_57 = arith.constant 0 : index
    %c0_58 = arith.constant 0 : index
    %57 = vector.load %arg6[%c0_57, %c0_58] : memref<64x128xf32, #tpu.memory_space<vmem>>, vector<64x128xf32>
    tpu.vector_store %arg6[%c0_57, %c0_58], %56 {strides = array<i32>} : memref<64x128xf32, #tpu.memory_space<vmem>>, vector<64x128xf32>,
    %c8_i32_59 = arith.constant 8 : i32
    %58 = arith.muli %arg1, %c8_i32_59 : i32
    %c1_i32_60 = arith.constant 1 : i32
    %59 = arith.addi %58, %c1_i32_60 : i32
    %c8_i32_61 = arith.constant 8 : i32
    %60 = arith.muli %59, %c8_i32_61 : i32
    %c2_62 = arith.constant 2 : index
    %c0_63 = arith.constant 0 : index
    %61 = arith.index_cast %60 : i32 to index
    %c0_64 = arith.constant 0 : index
    %62 = vector.load %arg2[%c2_62, %c0_63, %61, %c0_64] : memref<3x1x80x8xbf16, #tpu.memory_space<vmem>>, vector<1x1x64x8xbf16>
    %63 = vector.shape_cast %62 : vector<1x1x64x8xbf16> to vector<64x8xbf16>
    %c5 = arith.constant 5 : index
    %c0_65 = arith.constant 0 : index
    %c0_66 = arith.constant 0 : index
    %64 = vector.load %arg3[%c5, %c0_65, %c0_66] : memref<9x8x128xbf16, #tpu.memory_space<vmem>>, vector<1x8x128xbf16>
    %65 = vector.shape_cast %64 : vector<1x8x128xbf16> to vector<8x128xbf16>
    %cst_67 = arith.constant dense<0.000000e+00> : vector<64x128xf32>
    %66 = tpu.matmul %63, %65, %cst_67 {dimension_numbers = #tpu.dot_dimension_numbers<[1], [0], [0], [1], [0, 0, 1, 1], [], []>} : vector<64x8xbf16>, vector<8x128xbf16>, vector<64x128xf32> -> vector<64x128xf32>
    %c0_68 = arith.constant 0 : index
    %c0_69 = arith.constant 0 : index
    %67 = vector.load %arg6[%c0_68, %c0_69] : memref<64x128xf32, #tpu.memory_space<vmem>>, vector<64x128xf32>
    %68 = arith.addf %67, %66 : vector<64x128xf32>
    %c0_70 = arith.constant 0 : index
    %c0_71 = arith.constant 0 : index
    %69 = vector.load %arg6[%c0_70, %c0_71] : memref<64x128xf32, #tpu.memory_space<vmem>>, vector<64x128xf32>
    tpu.vector_store %arg6[%c0_70, %c0_71], %68 {strides = array<i32>} : memref<64x128xf32, #tpu.memory_space<vmem>>, vector<64x128xf32>,
    %c8_i32_72 = arith.constant 8 : i32
    %70 = arith.muli %arg1, %c8_i32_72 : i32
    %c2_i32 = arith.constant 2 : i32
    %71 = arith.addi %70, %c2_i32 : i32
    %c8_i32_73 = arith.constant 8 : i32
    %72 = arith.muli %71, %c8_i32_73 : i32
    %c0_74 = arith.constant 0 : index
    %c0_75 = arith.constant 0 : index
    %73 = arith.index_cast %72 : i32 to index
    %c0_76 = arith.constant 0 : index
    %74 = vector.load %arg2[%c0_74, %c0_75, %73, %c0_76] : memref<3x1x80x8xbf16, #tpu.memory_space<vmem>>, vector<1x1x64x8xbf16>
    %75 = vector.shape_cast %74 : vector<1x1x64x8xbf16> to vector<64x8xbf16>
    %c6 = arith.constant 6 : index
    %c0_77 = arith.constant 0 : index
    %c0_78 = arith.constant 0 : index
    %76 = vector.load %arg3[%c6, %c0_77, %c0_78] : memref<9x8x128xbf16, #tpu.memory_space<vmem>>, vector<1x8x128xbf16>
    %77 = vector.shape_cast %76 : vector<1x8x128xbf16> to vector<8x128xbf16>
    %cst_79 = arith.constant dense<0.000000e+00> : vector<64x128xf32>
    %78 = tpu.matmul %75, %77, %cst_79 {dimension_numbers = #tpu.dot_dimension_numbers<[1], [0], [0], [1], [0, 0, 1, 1], [], []>} : vector<64x8xbf16>, vector<8x128xbf16>, vector<64x128xf32> -> vector<64x128xf32>
    %c0_80 = arith.constant 0 : index
    %c0_81 = arith.constant 0 : index
    %79 = vector.load %arg6[%c0_80, %c0_81] : memref<64x128xf32, #tpu.memory_space<vmem>>, vector<64x128xf32>
    %80 = arith.addf %79, %78 : vector<64x128xf32>
    %c0_82 = arith.constant 0 : index
    %c0_83 = arith.constant 0 : index
    %81 = vector.load %arg6[%c0_82, %c0_83] : memref<64x128xf32, #tpu.memory_space<vmem>>, vector<64x128xf32>
    tpu.vector_store %arg6[%c0_82, %c0_83], %80 {strides = array<i32>} : memref<64x128xf32, #tpu.memory_space<vmem>>, vector<64x128xf32>,
    %c8_i32_84 = arith.constant 8 : i32
    %82 = arith.muli %arg1, %c8_i32_84 : i32
    %c2_i32_85 = arith.constant 2 : i32
    %83 = arith.addi %82, %c2_i32_85 : i32
    %c8_i32_86 = arith.constant 8 : i32
    %84 = arith.muli %83, %c8_i32_86 : i32
    %c1_87 = arith.constant 1 : index
    %c0_88 = arith.constant 0 : index
    %85 = arith.index_cast %84 : i32 to index
    %c0_89 = arith.constant 0 : index
    %86 = vector.load %arg2[%c1_87, %c0_88, %85, %c0_89] : memref<3x1x80x8xbf16, #tpu.memory_space<vmem>>, vector<1x1x64x8xbf16>
    %87 = vector.shape_cast %86 : vector<1x1x64x8xbf16> to vector<64x8xbf16>
    %c7 = arith.constant 7 : index
    %c0_90 = arith.constant 0 : index
    %c0_91 = arith.constant 0 : index
    %88 = vector.load %arg3[%c7, %c0_90, %c0_91] : memref<9x8x128xbf16, #tpu.memory_space<vmem>>, vector<1x8x128xbf16>
    %89 = vector.shape_cast %88 : vector<1x8x128xbf16> to vector<8x128xbf16>
    %cst_92 = arith.constant dense<0.000000e+00> : vector<64x128xf32>
    %90 = tpu.matmul %87, %89, %cst_92 {dimension_numbers = #tpu.dot_dimension_numbers<[1], [0], [0], [1], [0, 0, 1, 1], [], []>} : vector<64x8xbf16>, vector<8x128xbf16>, vector<64x128xf32> -> vector<64x128xf32>
    %c0_93 = arith.constant 0 : index
    %c0_94 = arith.constant 0 : index
    %91 = vector.load %arg6[%c0_93, %c0_94] : memref<64x128xf32, #tpu.memory_space<vmem>>, vector<64x128xf32>
    %92 = arith.addf %91, %90 : vector<64x128xf32>
    %c0_95 = arith.constant 0 : index
    %c0_96 = arith.constant 0 : index
    %93 = vector.load %arg6[%c0_95, %c0_96] : memref<64x128xf32, #tpu.memory_space<vmem>>, vector<64x128xf32>
    tpu.vector_store %arg6[%c0_95, %c0_96], %92 {strides = array<i32>} : memref<64x128xf32, #tpu.memory_space<vmem>>, vector<64x128xf32>,
    %c8_i32_97 = arith.constant 8 : i32
    %94 = arith.muli %arg1, %c8_i32_97 : i32
    %c2_i32_98 = arith.constant 2 : i32
    %95 = arith.addi %94, %c2_i32_98 : i32
    %c8_i32_99 = arith.constant 8 : i32
    %96 = arith.muli %95, %c8_i32_99 : i32
    %c2_100 = arith.constant 2 : index
    %c0_101 = arith.constant 0 : index
    %97 = arith.index_cast %96 : i32 to index
    %c0_102 = arith.constant 0 : index
    %98 = vector.load %arg2[%c2_100, %c0_101, %97, %c0_102] : memref<3x1x80x8xbf16, #tpu.memory_space<vmem>>, vector<1x1x64x8xbf16>
    %99 = vector.shape_cast %98 : vector<1x1x64x8xbf16> to vector<64x8xbf16>
    %c8 = arith.constant 8 : index
    %c0_103 = arith.constant 0 : index
    %c0_104 = arith.constant 0 : index
    %100 = vector.load %arg3[%c8, %c0_103, %c0_104] : memref<9x8x128xbf16, #tpu.memory_space<vmem>>, vector<1x8x128xbf16>
    %101 = vector.shape_cast %100 : vector<1x8x128xbf16> to vector<8x128xbf16>
    %cst_105 = arith.constant dense<0.000000e+00> : vector<64x128xf32>
    %102 = tpu.matmul %99, %101, %cst_105 {dimension_numbers = #tpu.dot_dimension_numbers<[1], [0], [0], [1], [0, 0, 1, 1], [], []>} : vector<64x8xbf16>, vector<8x128xbf16>, vector<64x128xf32> -> vector<64x128xf32>
    %c0_106 = arith.constant 0 : index
    %c0_107 = arith.constant 0 : index
    %103 = vector.load %arg6[%c0_106, %c0_107] : memref<64x128xf32, #tpu.memory_space<vmem>>, vector<64x128xf32>
    %104 = arith.addf %103, %102 : vector<64x128xf32>
    %c0_108 = arith.constant 0 : index
    %c0_109 = arith.constant 0 : index
    %105 = vector.load %arg6[%c0_108, %c0_109] : memref<64x128xf32, #tpu.memory_space<vmem>>, vector<64x128xf32>
    tpu.vector_store %arg6[%c0_108, %c0_109], %104 {strides = array<i32>} : memref<64x128xf32, #tpu.memory_space<vmem>>, vector<64x128xf32>,
    %c0_110 = arith.constant 0 : index
    %c0_111 = arith.constant 0 : index
    %106 = vector.load %arg6[%c0_110, %c0_111] : memref<64x128xf32, #tpu.memory_space<vmem>>, vector<64x128xf32>
    %107 = arith.truncf %106 : vector<64x128xf32> to vector<64x128xbf16>
    %c0_112 = arith.constant 0 : index
    %c0_113 = arith.constant 0 : index
    %c0_114 = arith.constant 0 : index
    %108 = vector.load %arg4[%c0_112, %c0_113, %c0_114] : memref<1x64x128xbf16, #tpu.memory_space<vmem>>, vector<1x64x128xbf16>
    %109 = vector.shape_cast %108 : vector<1x64x128xbf16> to vector<64x128xbf16>
    %110 = vector.shape_cast %107 : vector<64x128xbf16> to vector<1x64x128xbf16>
    tpu.vector_store %arg4[%c0_112, %c0_113, %c0_114], %110 {strides = array<i32>} : memref<1x64x128xbf16, #tpu.memory_space<vmem>>, vector<1x64x128xbf16>,
    %cst_115 = arith.constant dense<0.000000e+00> : vector<128xf32>
    %111 = vector.multi_reduction <add>, %106, %cst_115 [0] : vector<64x128xf32> to vector<128xf32>
    %112 = vector.shape_cast %111 : vector<128xf32> to vector<1x128xf32>
    %113 = arith.mulf %106, %106 : vector<64x128xf32>
    %cst_116 = arith.constant dense<0.000000e+00> : vector<128xf32>
    %114 = vector.multi_reduction <add>, %113, %cst_116 [0] : vector<64x128xf32> to vector<128xf32>
    %115 = vector.shape_cast %114 : vector<128xf32> to vector<1x128xf32>
    %116 = tpu.concatenate %112, %115 in 0 : vector<1x128xf32>, vector<1x128xf32> -> vector<2x128xf32>
    %c0_117 = arith.constant 0 : index
    %c0_118 = arith.constant 0 : index
    %c0_119 = arith.constant 0 : index
    %c0_120 = arith.constant 0 : index
    %117 = vector.load %arg5[%c0_117, %c0_118, %c0_119, %c0_120] : memref<1x1x2x128xf32, #tpu.memory_space<vmem>>, vector<1x1x2x128xf32>
    %118 = vector.shape_cast %117 : vector<1x1x2x128xf32> to vector<2x128xf32>
    %119 = vector.shape_cast %116 : vector<2x128xf32> to vector<1x1x2x128xf32>
    tpu.vector_store %arg5[%c0_117, %c0_118, %c0_119, %c0_120], %119 {strides = array<i32>} : memref<1x1x2x128xf32, #tpu.memory_space<vmem>>, vector<1x1x2x128xf32>,
    return
  }
  func.func @transform_0(%arg0: i32, %arg1: i32) -> (i32, i32, i32, i32) {
    %c0_i32 = arith.constant 0 : i32
    %c0_i32_0 = arith.constant 0 : i32
    %c0_i32_1 = arith.constant 0 : i32
    %c0_i32_2 = arith.constant 0 : i32
    return %c0_i32, %arg0, %c0_i32_0, %c0_i32_1 : i32, i32, i32, i32
  }
  func.func @transform_1(%arg0: i32, %arg1: i32) -> (i32, i32, i32) {
    %c0_i32 = arith.constant 0 : i32
    %c0_i32_0 = arith.constant 0 : i32
    %c0_i32_1 = arith.constant 0 : i32
    %c0_i32_2 = arith.constant 0 : i32
    return %c0_i32, %c0_i32_0, %c0_i32_1 : i32, i32, i32
  }
  func.func @transform_2(%arg0: i32, %arg1: i32) -> (i32, i32, i32) {
    %c0_i32 = arith.constant 0 : i32
    %c0_i32_0 = arith.constant 0 : i32
    return %arg0, %arg1, %c0_i32 : i32, i32, i32
  }
  func.func @transform_3(%arg0: i32, %arg1: i32) -> (i32, i32, i32, i32) {
    %c0_i32 = arith.constant 0 : i32
    %c0_i32_0 = arith.constant 0 : i32
    %c0_i32_1 = arith.constant 0 : i32
    return %arg0, %arg1, %c0_i32, %c0_i32_0 : i32, i32, i32, i32
  }
}

module attributes {stable_mosaic.version = 11 : i64} {
  func.func @_bn2_add_relu_kernel(%arg0: i32, %arg1: memref<128x128xbf16, #tpu.memory_space<vmem>>, %arg2: memref<1x128xf32, #tpu.memory_space<vmem>>, %arg3: memref<1x128xf32, #tpu.memory_space<vmem>>, %arg4: memref<128x128xbf16, #tpu.memory_space<vmem>>, %arg5: memref<1x128xf32, #tpu.memory_space<vmem>>, %arg6: memref<1x128xf32, #tpu.memory_space<vmem>>, %arg7: memref<128x128xf32, #tpu.memory_space<vmem>>) attributes {dimension_semantics = [#tpu.dimension_semantics<parallel>], iteration_bounds = array<i64: 1>, scalar_prefetch = 0 : i64, scratch_operands = 0 : i64, tpu.core_type = #tpu.core_type<tc>, window_params = [{transform_indices = @transform_0, window_bounds = array<i64: 128, 128>}, {pipeline_mode = #tpu.pipeline_mode<synchronous>, transform_indices = @transform_1, window_bounds = array<i64: 1, 128>}, {pipeline_mode = #tpu.pipeline_mode<synchronous>, transform_indices = @transform_2, window_bounds = array<i64: 1, 128>}, {transform_indices = @transform_3, window_bounds = array<i64: 128, 128>}, {pipeline_mode = #tpu.pipeline_mode<synchronous>, transform_indices = @transform_4, window_bounds = array<i64: 1, 128>}, {pipeline_mode = #tpu.pipeline_mode<synchronous>, transform_indices = @transform_5, window_bounds = array<i64: 1, 128>}, {transform_indices = @transform_6, window_bounds = array<i64: 128, 128>}]} {
    %c0 = arith.constant 0 : index
    %c0_0 = arith.constant 0 : index
    %0 = vector.load %arg1[%c0, %c0_0] : memref<128x128xbf16, #tpu.memory_space<vmem>>, vector<128x128xbf16>
    %1 = arith.extf %0 : vector<128x128xbf16> to vector<128x128xf32>
    %c0_1 = arith.constant 0 : index
    %c0_2 = arith.constant 0 : index
    %2 = vector.load %arg2[%c0_1, %c0_2] : memref<1x128xf32, #tpu.memory_space<vmem>>, vector<1x128xf32>
    %3 = vector.broadcast %2 : vector<1x128xf32> to vector<128x128xf32>
    %4 = arith.mulf %1, %3 : vector<128x128xf32>
    %c0_3 = arith.constant 0 : index
    %c0_4 = arith.constant 0 : index
    %5 = vector.load %arg3[%c0_3, %c0_4] : memref<1x128xf32, #tpu.memory_space<vmem>>, vector<1x128xf32>
    %6 = vector.broadcast %5 : vector<1x128xf32> to vector<128x128xf32>
    %7 = arith.addf %4, %6 : vector<128x128xf32>
    %c0_5 = arith.constant 0 : index
    %c0_6 = arith.constant 0 : index
    %8 = vector.load %arg4[%c0_5, %c0_6] : memref<128x128xbf16, #tpu.memory_space<vmem>>, vector<128x128xbf16>
    %9 = arith.extf %8 : vector<128x128xbf16> to vector<128x128xf32>
    %c0_7 = arith.constant 0 : index
    %c0_8 = arith.constant 0 : index
    %10 = vector.load %arg5[%c0_7, %c0_8] : memref<1x128xf32, #tpu.memory_space<vmem>>, vector<1x128xf32>
    %11 = vector.broadcast %10 : vector<1x128xf32> to vector<128x128xf32>
    %12 = arith.mulf %9, %11 : vector<128x128xf32>
    %13 = arith.addf %7, %12 : vector<128x128xf32>
    %c0_9 = arith.constant 0 : index
    %c0_10 = arith.constant 0 : index
    %14 = vector.load %arg6[%c0_9, %c0_10] : memref<1x128xf32, #tpu.memory_space<vmem>>, vector<1x128xf32>
    %15 = vector.broadcast %14 : vector<1x128xf32> to vector<128x128xf32>
    %16 = arith.addf %13, %15 : vector<128x128xf32>
    %cst = arith.constant 0.000000e+00 : f32
    %17 = vector.broadcast %cst : f32 to vector<128x128xf32>
    %18 = arith.maximumf %16, %17 : vector<128x128xf32>
    %c0_11 = arith.constant 0 : index
    %c0_12 = arith.constant 0 : index
    %19 = vector.load %arg7[%c0_11, %c0_12] : memref<128x128xf32, #tpu.memory_space<vmem>>, vector<128x128xf32>
    tpu.vector_store %arg7[%c0_11, %c0_12], %18 {strides = array<i32>} : memref<128x128xf32, #tpu.memory_space<vmem>>, vector<128x128xf32>,
    return
  }
  func.func @transform_0(%arg0: i32) -> (i32, i32) {
    %c0_i32 = arith.constant 0 : i32
    %c0_i32_0 = arith.constant 0 : i32
    return %arg0, %c0_i32 : i32, i32
  }
  func.func @transform_1(%arg0: i32) -> (i32, i32) {
    %c0_i32 = arith.constant 0 : i32
    %c0_i32_0 = arith.constant 0 : i32
    %c0_i32_1 = arith.constant 0 : i32
    return %c0_i32, %c0_i32_0 : i32, i32
  }
  func.func @transform_2(%arg0: i32) -> (i32, i32) {
    %c0_i32 = arith.constant 0 : i32
    %c0_i32_0 = arith.constant 0 : i32
    %c0_i32_1 = arith.constant 0 : i32
    return %c0_i32, %c0_i32_0 : i32, i32
  }
  func.func @transform_3(%arg0: i32) -> (i32, i32) {
    %c0_i32 = arith.constant 0 : i32
    %c0_i32_0 = arith.constant 0 : i32
    return %arg0, %c0_i32 : i32, i32
  }
  func.func @transform_4(%arg0: i32) -> (i32, i32) {
    %c0_i32 = arith.constant 0 : i32
    %c0_i32_0 = arith.constant 0 : i32
    %c0_i32_1 = arith.constant 0 : i32
    return %c0_i32, %c0_i32_0 : i32, i32
  }
  func.func @transform_5(%arg0: i32) -> (i32, i32) {
    %c0_i32 = arith.constant 0 : i32
    %c0_i32_0 = arith.constant 0 : i32
    %c0_i32_1 = arith.constant 0 : i32
    return %c0_i32, %c0_i32_0 : i32, i32
  }
  func.func @transform_6(%arg0: i32) -> (i32, i32) {
    %c0_i32 = arith.constant 0 : i32
    %c0_i32_0 = arith.constant 0 : i32
    return %arg0, %c0_i32 : i32, i32
  }
}

</mosaic_0001>

<bundles_post_ra>
// kernel: residual_block_forward.6
= control target key start
LH: loop header
LB: loop body
LE: loop exit
PB: predicated region body
PF: predicated region fallthrough
CT: control target
= control target key end

     0   :  { %s1002_s12 = smov 0   ;;  %s1004_s13 = smov 0   ;;  %s1142_s0 = inlined_call_operand.vmem [shape: bf16[6,2,72,4], index: 0, kind: input, shape index: {}]   ;;  %s1143_s1 = inlined_call_operand.vmem [shape: bf16[1,4,128], index: 1, kind: input, shape index: {}]   ;;  %s1144_s2 = inlined_call_operand.vmem [shape: bf16[2,64,128], index: 2, kind: output, shape index: {0}]   ;;  %s1145_s3 = inlined_call_operand.vmem [shape: f32[2,1,2,128], index: 3, kind: output, shape index: {1}]  }
   0x1   :  { %s1006_s14 = smov 0   ;;  %s1008_s15 = smov 0  }
   0x2   :  { %s1010_s16 = smov 0  }
   0x3 LB: > { %s26_s17 = sadd.s32 1, %s976_s15  ;;  %p40_p1 = scmp.ne.s32.totalorder %s968_s13, %s964_s12  ;;  %s980_s16 = sphi %s1010_s16, %s14_s16   ;;  %s976_s15 = sphi %s1008_s15, %s1149_s15   ;;  %s972_s14 = sphi %s1006_s14, %s1148_s14   ;;  %s968_s13 = sphi %s1004_s13, %s1147_s13   ;;  %s964_s12 = sphi %s1002_s12, %s1146_s12  }
   0x4   : > { %p28_p0 = scmp.ge.s32.totalorder %s26_s17, 2  ;;  %p41_p2 = scmp.eq.s32.totalorder %s980_s16, 0 }
   0x5   : > { %s33_s19 = sadd.s32 1, %s968_s13  ;;  %p812_p5 = scmp.ge.s32.totalorder %s980_s16, 2 }
   0x6   : > { %s1151_s17 = smov (%p28_p0, %s26_s17), 0  ;;  %p42_p3 = por %p41_p2, %p40_p1 }
   0x7   : > { %s30_s18 = ssub.s32 %s976_s15, %s1151_s17  ;;  %146 = sbr.rel (%p812_p5) target bundleno = 34 (0x22), region = 20 }
   0x8   : > { %p31_p4 = scmp.eq.s32.totalorder %s30_s18, 0 }
   0xa   : > { %s1037_s20 = scalar_select %p31_p4, %s968_s13, %s33_s19  }
   0xe   : > { %149 = sbr.rel (!%p42_p3) target bundleno = 34 (0x22), region = 24  ;;  %s151_s21 = sand.u32 (%p42_p3), 1, %s968_s13  }
   0xf   : > { %s896_s22 = smul.u32 (%p42_p3), 36, %s976_s15 }
  0x10   : > { %s895_s23 = smul.u32 (%p42_p3), 216, %s151_s21 }
  0x11   : > { %s1045_s26 = scalar_lea.vmem (%p42_p3), %s1142_s0, %s896_s22 }
  0x12   : > { %v172_v0 = vld [vmem:[%s1045_s26] sm:$0xff] (%p42_p3)   ;;  %v176_v1 = vld [vmem:[%s1045_s26 + $0x8] sm:$0xff] (%p42_p3)   ;;  %v180_v2 = vld [vmem:[%s1045_s26 + $0x10] sm:$0xff] (%p42_p3)   ;;  %s1050_s27 = scalar_lea.vmem (%p42_p3), [#allocation3], %s895_s23 }
  0x13   : > { %173 = vst [vmem:[%s1050_s27] sm:$0xff] (%p42_p3), %v172_v0   ;;  %177 = vst [vmem:[%s1050_s27 + $0x8] sm:$0xff] (%p42_p3), %v176_v1   ;;  %v184_v3 = vld [vmem:[%s1045_s26 + $0x18] sm:$0xff] (%p42_p3)   ;;  %v188_v4 = vld [vmem:[%s1045_s26 + $0x20] sm:$0xf] (%p42_p3) }
  0x14   : > { %181 = vst [vmem:[%s1050_s27 + $0x10] sm:$0xff] (%p42_p3), %v180_v2   ;;  %v190_v5 = vld [vmem:[%s1045_s26 + $0x48] sm:$0xff] (%p42_p3)   ;;  %185 = vst [vmem:[%s1050_s27 + $0x18] sm:$0xff] (%p42_p3), %v184_v3   ;;  %v194_v6 = vld [vmem:[%s1045_s26 + $0x50] sm:$0xff] (%p42_p3)  }
  0x15   : > { %189 = vst [vmem:[%s1050_s27 + $0x20] sm:$0xf] %v188_v4  ;;  %191 = vst [vmem:[%s1050_s27 + $0x24] sm:$0xff] %v190_v5   ;;  %v198_v7 = vld [vmem:[%s1045_s26 + $0x58] sm:$0xff]   ;;  %v202_v8 = vld [vmem:[%s1045_s26 + $0x60] sm:$0xff]  }
  0x16   : > { %195 = vst [vmem:[%s1050_s27 + $0x2c] sm:$0xff] %v194_v6   ;;  %199 = vst [vmem:[%s1050_s27 + $0x34] sm:$0xff] %v198_v7   ;;  %v206_v9 = vld [vmem:[%s1045_s26 + $0x68] sm:$0xf]  ;;  %v208_v10 = vld [vmem:[%s1045_s26 + $0x90] sm:$0xff]  }
  0x17   : > { %203 = vst [vmem:[%s1050_s27 + $0x3c] sm:$0xff] %v202_v8   ;;  %v212_v11 = vld [vmem:[%s1045_s26 + $0x98] sm:$0xff]   ;;  %207 = vst [vmem:[%s1050_s27 + $0x44] sm:$0xf] %v206_v9  ;;  %v216_v12 = vld [vmem:[%s1045_s26 + $0xa0] sm:$0xff]  }
  0x18   : > { %209 = vst [vmem:[%s1050_s27 + $0x48] sm:$0xff] %v208_v10   ;;  %213 = vst [vmem:[%s1050_s27 + $0x50] sm:$0xff] %v212_v11   ;;  %v220_v13 = vld [vmem:[%s1045_s26 + $0xa8] sm:$0xff]   ;;  %v224_v14 = vld [vmem:[%s1045_s26 + $0xb0] sm:$0xf] }
  0x19   : > { %217 = vst [vmem:[%s1050_s27 + $0x58] sm:$0xff] %v216_v12   ;;  %221 = vst [vmem:[%s1050_s27 + $0x60] sm:$0xff] %v220_v13   ;;  %v226_v15 = vld [vmem:[%s1045_s26 + $0xd8] sm:$0xff]   ;;  %v230_v16 = vld [vmem:[%s1045_s26 + $0xe0] sm:$0xff]  }
  0x1a   : > { %225 = vst [vmem:[%s1050_s27 + $0x68] sm:$0xf] %v224_v14  ;;  %v234_v17 = vld [vmem:[%s1045_s26 + $0xe8] sm:$0xff]   ;;  %227 = vst [vmem:[%s1050_s27 + $0x6c] sm:$0xff] %v226_v15   ;;  %v238_v18 = vld [vmem:[%s1045_s26 + $0xf0] sm:$0xff]  }
  0x1b   : > { %231 = vst [vmem:[%s1050_s27 + $0x74] sm:$0xff] %v230_v16   ;;  %235 = vst [vmem:[%s1050_s27 + $0x7c] sm:$0xff] %v234_v17   ;;  %v242_v19 = vld [vmem:[%s1045_s26 + $0xf8] sm:$0xf]  ;;  %v244_v20 = vld [vmem:[%s1045_s26 + $0x120] sm:$0xff]  }
  0x1c   : > { %239 = vst [vmem:[%s1050_s27 + $0x84] sm:$0xff] %v238_v18   ;;  %243 = vst [vmem:[%s1050_s27 + $0x8c] sm:$0xf] %v242_v19  ;;  %v248_v21 = vld [vmem:[%s1045_s26 + $0x128] sm:$0xff]   ;;  %v252_v22 = vld [vmem:[%s1045_s26 + $0x130] sm:$0xff]  }
  0x1d   : > { %245 = vst [vmem:[%s1050_s27 + $0x90] sm:$0xff] %v244_v20   ;;  %v256_v23 = vld [vmem:[%s1045_s26 + $0x138] sm:$0xff]   ;;  %249 = vst [vmem:[%s1050_s27 + $0x98] sm:$0xff] %v248_v21   ;;  %v260_v24 = vld [vmem:[%s1045_s26 + $0x140] sm:$0xf] }
  0x1e   : > { %253 = vst [vmem:[%s1050_s27 + $0xa0] sm:$0xff] %v252_v22   ;;  %257 = vst [vmem:[%s1050_s27 + $0xa8] sm:$0xff] %v256_v23   ;;  %v262_v25 = vld [vmem:[%s1045_s26 + $0x168] sm:$0xff]   ;;  %v266_v26 = vld [vmem:[%s1045_s26 + $0x170] sm:$0xff]  }
  0x1f   : > { %261 = vst [vmem:[%s1050_s27 + $0xb0] sm:$0xf] %v260_v24  ;;  %263 = vst [vmem:[%s1050_s27 + $0xb4] sm:$0xff] %v262_v25   ;;  %v270_v27 = vld [vmem:[%s1045_s26 + $0x178] sm:$0xff]   ;;  %v274_v28 = vld [vmem:[%s1045_s26 + $0x180] sm:$0xff]  }
  0x20   : > { %267 = vst [vmem:[%s1050_s27 + $0xbc] sm:$0xff] %v266_v26   ;;  %v278_v29 = vld [vmem:[%s1045_s26 + $0x188] sm:$0xf]  ;;  %271 = vst [vmem:[%s1050_s27 + $0xc4] sm:$0xff] %v270_v27  }
  0x21   : > { %275 = vst [vmem:[%s1050_s27 + $0xcc] sm:$0xff] %v274_v28   ;;  %279 = vst [vmem:[%s1050_s27 + $0xd4] sm:$0xf] %v278_v29 }
  0x22 PF: > { %p814_p6 = scmp.ge.s32.totalorder %s980_s16, 1  ;;  %p409_p7 = scmp.lt.s32.totalorder %s980_s16, 3 }
  0x24   : > { %p410_p8 = pnand %p814_p6, %p409_p7 }
  0x25   : > { %v482_v30 = vld [vmem:[%s1143_s1] sm:$0x3] (!%p410_p8)  ;;  %vm516_vm0 = vcmask (!%p410_p8), 1041408   ;;  %s416_s30 = sand.u32 (!%p410_p8), 1, %s964_s12   ;;  %vm503_vm1 = vcmask (!%p410_p8), 31744   ;;  %p451_p9 = scmp.lt.s32.totalorder (!%p410_p8), %s972_s14, 1 }
  0x26   : > { %413 = sbr.rel (%p410_p8) target bundleno = 289 (0x121), region = 65  ;;  %893 = vmatprep.subr.msk.bf16.mxu0 (!%p410_p8), %vm516_vm0, %v482_v30  ;;  %v518_v31 = vsel (!%p410_p8), %vm516_vm0, %v482_v30, 0  ;;  %894 = vmatprep.subr.msk.bf16.mxu1 (!%p410_p8), %vm516_vm0, %v482_v30  ;;  %vm675_vm2 = vcmask (!%p410_p8), 1040384  }
  0x27   : > { %s897_s4 = smul.u32 (!%p410_p8), 216, %s416_s30  ;;  %882 = vmatpush3.bf16.msra.mxu0 (!%p410_p8), %v518_v31  ;;  %892 = vmatpush3.bf16.msra.mxu1 (!%p410_p8), %v518_v31 }
  0x29   : > { %s418_s5 = scalar_lea.vmem (!%p410_p8), [#allocation3], %s897_s4 }
  0x2a   : > { %v938_v32 = vld [vmem:[%s418_s5 + $0x6c] sm:$0xff] (!%p410_p8)   ;;  %v939_v33 = vld [vmem:[%s418_s5 + $0x74] sm:$0xff] (!%p410_p8)   ;;  %v940_v34 = vld [vmem:[%s418_s5 + $0x7c] sm:$0xff] (!%p410_p8)  }
  0x2b   : > { %883 = vmatprep.mubr.msk.bf16.mxu0 (!%p410_p8), %vm503_vm1, %v938_v32  ;;  %v941_v35 = vld [vmem:[%s418_s5 + $0x84] sm:$0xff] (!%p410_p8)   ;;  %887 = vmatprep.mubr.msk.bf16.mxu1 (!%p410_p8), %vm503_vm1, %v940_v34 }
  0x2c   : > { %884 = vmatmul.mubr.msk.bf16.vlgmr.msra.gmra.mrb[0].mxu0 (!%p410_p8), %vm503_vm1, %v939_v33  ;;  %888 = vmatmul.mubr.msk.bf16.vlgmr.msra.gmra.mrb[0].mxu1 (!%p410_p8), %vm503_vm1, %v941_v35 }
  0x2d   : > { %s1153_s14 = smov (!%p451_p9, %s972_s14), 1 }
  0x2e   : > { %s844_s6 = sshll.u32 %s1153_s14, 5  ;;  %s817_s10 = sshll.u32 %s1153_s14, 1 }
  0x2f   : > { %s458_s9 = scalar_lea.vmem %s1144_s2, %s844_s6  ;;  %s466_s18 = scalar_lea.vmem %s1145_s3, %s817_s10 }
  0xff   : > { %v885_v36 = vpop.f32.mrb[0].mxu0  ;;  %v889_v39 = vpop.f32.mrb[0].mxu1 }
 0x100   : > { %v554_v37 = vpop.f32.mrb[1].mxu0  ;;  %v570_v42 = vpop.f32.mrb[1].mxu1  ;;  %v656_v50 = vmul.f32 %v885_v36, %v885_v36  ;;  %v660_v63 = vmul.f32 %v889_v39, %v889_v39 }
 0x101   : > { %v886_v38 = vpop.f32.mrb[2].mxu0  ;;  %v654_v43 = vmul.f32 %v554_v37, %v554_v37  ;;  %v890_v47 = vpop.f32.mrb[2].mxu1  ;;  %v658_v57 = vmul.f32 %v570_v42, %v570_v42 }
 0x102   : > { %v861_v40 = vpack.c.bf16 %v886_v38, %v885_v36  ;;  %v557_v41 = vpop.f32.mrb[3].mxu0  ;;  %v871_v48 = vpack.c.bf16 %v890_v47, %v889_v39  ;;  %v573_v49 = vpop.f32.mrb[3].mxu1  ;;  %v657_v54 = vmul.f32 %v886_v38, %v886_v38  ;;  %v661_v2 = vmul.f32 %v890_v47, %v890_v47 }
 0x103   : > { %v856_v44 = vpack.c.bf16 %v557_v41, %v554_v37  ;;  %v641_v45 = vadd.f32 %v557_v41, %v554_v37  ;;  %v655_v46 = vmul.f32 %v557_v41, %v557_v41  ;;  %v866_v53 = vpack.c.bf16 %v573_v49, %v570_v42 }
 0x104   : > { %873 = vst [vmem:[%s458_s9 + $0x8] sm:$0xff] %v861_v40   ;;  %875 = vst [vmem:[%s458_s9 + $0x18] sm:$0xff] %v871_v48   ;;  %v659_v62 = vmul.f32 %v573_v49, %v573_v49 }
 0x105   : > { %857 = vst [vmem:[%s458_s9] sm:$0xff] %v856_v44   ;;  %v642_v51 = vadd.f32 %v885_v36, %v641_v45  ;;  %v662_v52 = vadd.f32 %v655_v46, %v654_v43  ;;  %874 = vst [vmem:[%s458_s9 + $0x10] sm:$0xff] %v866_v53  }
 0x107   : > { %v663_v55 = vadd.f32 %v662_v52, %v656_v50  ;;  %v643_v56 = vadd.f32 %v886_v38, %v642_v51 }
 0x109   : > { %v644_v58 = vadd.f32 %v643_v56, %v570_v42  ;;  %v664_v59 = vadd.f32 %v663_v55, %v657_v54 }
 0x10b   : > { %v665_v60 = vadd.f32 %v664_v59, %v658_v57  ;;  %v645_v61 = vadd.f32 %v644_v58, %v573_v49 }
 0x10d   : > { %v646_v0 = vadd.f32 %v889_v39, %v645_v61  ;;  %v666_v1 = vadd.f32 %v665_v60, %v659_v62 }
 0x10f   : > { %v647_v3 = vadd.f32 %v890_v47, %v646_v0  ;;  %v667_v4 = vadd.f32 %v666_v1, %v660_v63 }
 0x111   : > { %v648_v5 = vrot.slane %v647_v3, 4  ;;  %v668_v6 = vadd.f32 %v667_v4, %v661_v2 }
 0x113   : > { %v649_v7 = vadd.f32 %v648_v5, %v647_v3  ;;  %v669_v8 = vrot.slane %v668_v6, 4 }
 0x115   : > { %v650_v9 = vrot.slane %v649_v7, 2  ;;  %v670_v10 = vadd.f32 %v669_v8, %v668_v6 }
 0x117   : > { %v651_v11 = vadd.f32 %v650_v9, %v649_v7  ;;  %v671_v12 = vrot.slane %v670_v10, 2 }
 0x119   : > { %v652_v13 = vrot.slane %v651_v11, 1  ;;  %v672_v14 = vadd.f32 %v671_v12, %v670_v10 }
 0x11b   : > { %v673_v15 = vrot.slane %v672_v14, 1  ;;  %v653_v16 = vadd.f32 %v652_v13, %v651_v11 }
 0x11d   : > { %v674_v17 = vadd.f32 %v673_v15, %v672_v14 }
 0x11f   : > { %v676_v18 = vsel %vm675_vm2, %v653_v16, %v674_v17 }
 0x120   : > { %677 = vst [vmem:[%s466_s18] sm:$0x3] %v676_v18 }
 0x121 PF: > { %s14_s16 = sadd.s32 1, %s980_s16   ;;  %s1146_s12 = smov %s968_s13 }
 0x122   : > { %p11_p10 = scmp.ge.s32.totalorder %s14_s16, 4   ;;  %s1147_s13 = smov %s1037_s20 }
 0x123   : > { %s1148_s14 = smov %s976_s15  ;;  %s1149_s15 = smov %s1151_s17 }
 0x124   :  { %13 = sbr.rel (!%p11_p10) target bundleno = 3 (0x3), region = 117 }

// kernel: residual_block_forward.7
= control target key start
LH: loop header
LB: loop body
LE: loop exit
PB: predicated region body
PF: predicated region fallthrough
CT: control target
= control target key end

     0   :  { %s528_s0 = inlined_call_operand.vmem [shape: bf16[128,128], index: 0, kind: input, shape index: {}]   ;;  %s529_s1 = inlined_call_operand.vmem [shape: f32[1,128], index: 1, kind: input, shape index: {}]   ;;  %s530_s2 = inlined_call_operand.vmem [shape: f32[1,128], index: 2, kind: input, shape index: {}]   ;;  %s531_s3 = inlined_call_operand.vmem [shape: bf16[128,128], index: 3, kind: input, shape index: {}]   ;;  %s532_s4 = inlined_call_operand.vmem [shape: f32[1,128], index: 4, kind: input, shape index: {}]   ;;  %s533_s5 = inlined_call_operand.vmem [shape: f32[1,128], index: 5, kind: input, shape index: {}]   ;;  %s534_s6 = inlined_call_operand.vmem [shape: f32[128,128], index: 6, kind: output, shape index: {}]  }
   0x1   :  { %v236_v0 = vld [vmem:[%s528_s0] sm:$0xff]   ;;  %v299_v9 = vld [vmem:[%s528_s0 + $0x8] sm:$0xff]   ;;  %v300_v15 = vld [vmem:[%s528_s0 + $0x10] sm:$0xff]  }
   0x2   :  { %v354_v1 = vld [vmem:[%s529_s1] ss:$0 sm:$0xff]  ;;  %v237_v2 = vunpack.c.l.bf16 %v236_v0  ;;  %v238_v5 = vunpack.c.h.bf16 %v236_v0  ;;  %v306_v10 = vld [vmem:[%s531_s3 + $0x8] sm:$0xff]   ;;  %v241_v13 = vunpack.c.l.bf16 %v299_v9  ;;  %v307_v16 = vld [vmem:[%s531_s3 + $0x10] sm:$0xff]   ;;  %v242_v19 = vunpack.c.h.bf16 %v299_v9 }
   0x3   :  { %v268_v3 = vld [vmem:[%s531_s3] sm:$0xff]   ;;  %v273_v14 = vunpack.c.l.bf16 %v306_v10  ;;  %v274_v20 = vunpack.c.h.bf16 %v306_v10  ;;  %v245_v28 = vunpack.c.l.bf16 %v300_v15  ;;  %v277_v29 = vunpack.c.l.bf16 %v307_v16  ;;  %v301_v34 = vld [vmem:[%s528_s0 + $0x18] sm:$0xff]   ;;  %v303_v9 = vld [vmem:[%s528_s0 + $0x28] sm:$0xff]  }
   0x4   :  { %v362_v4 = vld [vmem:[%s532_s4] ss:$0 sm:$0xff]  ;;  %v269_v7 = vunpack.c.l.bf16 %v268_v3  ;;  %v270_v8 = vunpack.c.h.bf16 %v268_v3  ;;  %v62_v11 = vmul.f32 %v237_v2, %v354_v1  ;;  %v63_v12 = vmul.f32 %v238_v5, %v354_v1  ;;  %v308_v43 = vld [vmem:[%s531_s3 + $0x18] sm:$0xff]  }
   0x5   :  { %v367_v6 = vld [vmem:[%s530_s2] ss:$0 sm:$0xff]  ;;  %v64_v23 = vmul.f32 %v241_v13, %v354_v1  ;;  %v142_v24 = vmul.f32 %v273_v14, %v362_v4  ;;  %v65_v26 = vmul.f32 %v242_v19, %v354_v1  ;;  %v143_v27 = vmul.f32 %v274_v20, %v362_v4  ;;  %v310_v14 = vld [vmem:[%s531_s3 + $0x28] sm:$0xff]  }
   0x6   :  { %v140_v17 = vmul.f32 %v269_v7, %v362_v4  ;;  %v141_v18 = vmul.f32 %v270_v8, %v362_v4  ;;  %v85_v21 = vadd.f32 %v367_v6, %v62_v11  ;;  %v86_v22 = vadd.f32 %v367_v6, %v63_v12  ;;  %v392_v25 = vld [vmem:[%s533_s5] ss:$0 sm:$0xff] }
   0x7   :  { %v87_v32 = vadd.f32 %v367_v6, %v64_v23  ;;  %v246_v33 = vunpack.c.h.bf16 %v300_v15  ;;  %v88_v35 = vadd.f32 %v367_v6, %v65_v26  ;;  %v66_v36 = vmul.f32 %v245_v28, %v354_v1  ;;  %v302_v56 = vld [vmem:[%s528_s0 + $0x20] sm:$0xff]   ;;  %v304_v28 = vld [vmem:[%s528_s0 + $0x30] sm:$0xff]  }
   0x8   :  { %v156_v30 = vadd.f32 %v140_v17, %v85_v21  ;;  %v157_v31 = vadd.f32 %v141_v18, %v86_v22  ;;  %v144_v37 = vmul.f32 %v277_v29, %v362_v4  ;;  %v278_v38 = vunpack.c.h.bf16 %v307_v16  ;;  %v309_v61 = vld [vmem:[%s531_s3 + $0x20] sm:$0xff]  }
   0x9   :  { %v158_v41 = vadd.f32 %v142_v24, %v87_v32  ;;  %v67_v42 = vmul.f32 %v246_v33, %v354_v1  ;;  %v159_v44 = vadd.f32 %v143_v27, %v88_v35  ;;  %v89_v45 = vadd.f32 %v367_v6, %v66_v36  ;;  %v311_v33 = vld [vmem:[%s531_s3 + $0x30] sm:$0xff]  }
   0xa   :  { %v179_v39 = vadd.f32 %v392_v25, %v156_v30  ;;  %v180_v40 = vadd.f32 %v392_v25, %v157_v31  ;;  %v145_v46 = vmul.f32 %v278_v38, %v362_v4  ;;  %v249_v47 = vunpack.c.l.bf16 %v301_v34 }
   0xb   :  { %v181_v50 = vadd.f32 %v392_v25, %v158_v41  ;;  %v90_v51 = vadd.f32 %v367_v6, %v67_v42  ;;  %v182_v52 = vadd.f32 %v392_v25, %v159_v44  ;;  %v160_v53 = vadd.f32 %v144_v37, %v89_v45 }
   0xc   :  { %v195_v48 = vmax.f32 %v179_v39, 0.0  ;;  %v196_v49 = vmax.f32 %v180_v40, 0.0  ;;  %v68_v54 = vmul.f32 %v249_v47, %v354_v1  ;;  %v281_v55 = vunpack.c.l.bf16 %v308_v43 }
   0xd   :  { %v197_v57 = vmax.f32 %v181_v50, 0.0  ;;  %v161_v58 = vadd.f32 %v145_v46, %v90_v51  ;;  %v250_v59 = vunpack.c.h.bf16 %v301_v34  ;;  %v282_v60 = vunpack.c.h.bf16 %v308_v43  ;;  %v305_v50 = vld [vmem:[%s528_s0 + $0x38] sm:$0xff]  }
   0xe   :  { %211 = vst [vmem:[%s534_s6] sm:$0xff] %v195_v48  ;;  %212 = vst [vmem:[%s534_s6 + $0x8] sm:$0xff] %v196_v49  ;;  %v198_v62 = vmax.f32 %v182_v52, 0.0  ;;  %v183_v63 = vadd.f32 %v392_v25, %v160_v53  ;;  %v91_v0 = vadd.f32 %v367_v6, %v68_v54  ;;  %v146_v2 = vmul.f32 %v281_v55, %v362_v4  ;;  %v312_v51 = vld [vmem:[%s531_s3 + $0x38] sm:$0xff]  }
   0xf   :  { %213 = vst [vmem:[%s534_s6 + $0x10] sm:$0xff] %v197_v57  ;;  %v184_v3 = vadd.f32 %v392_v25, %v161_v58  ;;  %v69_v5 = vmul.f32 %v250_v59, %v354_v1  ;;  %v147_v7 = vmul.f32 %v282_v60, %v362_v4  ;;  %v253_v8 = vunpack.c.l.bf16 %v302_v56 }
  0x10   :  { %214 = vst [vmem:[%s534_s6 + $0x18] sm:$0xff] %v198_v62  ;;  %v199_v10 = vmax.f32 %v183_v63, 0.0  ;;  %v162_v11 = vadd.f32 %v146_v2, %v91_v0  ;;  %v285_v12 = vunpack.c.l.bf16 %v309_v61  ;;  %v254_v13 = vunpack.c.h.bf16 %v302_v56 }
  0x11   :  { %v200_v15 = vmax.f32 %v184_v3, 0.0  ;;  %v92_v16 = vadd.f32 %v367_v6, %v69_v5  ;;  %v70_v17 = vmul.f32 %v253_v8, %v354_v1  ;;  %v286_v18 = vunpack.c.h.bf16 %v309_v61 }
  0x12   :  { %215 = vst [vmem:[%s534_s6 + $0x20] sm:$0xff] %v199_v10  ;;  %v185_v19 = vadd.f32 %v392_v25, %v162_v11  ;;  %v148_v20 = vmul.f32 %v285_v12, %v362_v4  ;;  %v71_v21 = vmul.f32 %v254_v13, %v354_v1  ;;  %v257_v22 = vunpack.c.l.bf16 %v303_v9 }
  0x13   :  { %216 = vst [vmem:[%s534_s6 + $0x28] sm:$0xff] %v200_v15  ;;  %v163_v23 = vadd.f32 %v147_v7, %v92_v16  ;;  %v93_v24 = vadd.f32 %v367_v6, %v70_v17  ;;  %v149_v26 = vmul.f32 %v286_v18, %v362_v4  ;;  %v289_v27 = vunpack.c.l.bf16 %v310_v14 }
  0x14   :  { %v201_v29 = vmax.f32 %v185_v19, 0.0  ;;  %v94_v30 = vadd.f32 %v367_v6, %v71_v21  ;;  %v72_v31 = vmul.f32 %v257_v22, %v354_v1  ;;  %v258_v32 = vunpack.c.h.bf16 %v303_v9 }
  0x15   :  { %v186_v34 = vadd.f32 %v392_v25, %v163_v23  ;;  %v164_v35 = vadd.f32 %v148_v20, %v93_v24  ;;  %v150_v36 = vmul.f32 %v289_v27, %v362_v4  ;;  %v290_v37 = vunpack.c.h.bf16 %v310_v14 }
  0x16   :  { %217 = vst [vmem:[%s534_s6 + $0x30] sm:$0xff] %v201_v29  ;;  %v165_v38 = vadd.f32 %v149_v26, %v94_v30  ;;  %v95_v39 = vadd.f32 %v367_v6, %v72_v31  ;;  %v73_v40 = vmul.f32 %v258_v32, %v354_v1  ;;  %v261_v41 = vunpack.c.l.bf16 %v304_v28 }
  0x17   :  { %v202_v42 = vmax.f32 %v186_v34, 0.0  ;;  %v187_v43 = vadd.f32 %v392_v25, %v164_v35  ;;  %v151_v44 = vmul.f32 %v290_v37, %v362_v4  ;;  %v293_v45 = vunpack.c.l.bf16 %v311_v33 }
  0x18   :  { %v188_v46 = vadd.f32 %v392_v25, %v165_v38  ;;  %v166_v47 = vadd.f32 %v150_v36, %v95_v39  ;;  %v96_v48 = vadd.f32 %v367_v6, %v73_v40  ;;  %v74_v49 = vmul.f32 %v261_v41, %v354_v1 }
  0x19   :  { %218 = vst [vmem:[%s534_s6 + $0x38] sm:$0xff] %v202_v42  ;;  %v203_v52 = vmax.f32 %v187_v43, 0.0  ;;  %v152_v53 = vmul.f32 %v293_v45, %v362_v4  ;;  %v262_v54 = vunpack.c.h.bf16 %v304_v28  ;;  %v294_v55 = vunpack.c.h.bf16 %v311_v33 }
  0x1a   :  { %v204_v56 = vmax.f32 %v188_v46, 0.0  ;;  %v189_v57 = vadd.f32 %v392_v25, %v166_v47  ;;  %v167_v58 = vadd.f32 %v151_v44, %v96_v48  ;;  %v97_v59 = vadd.f32 %v367_v6, %v74_v49 }
  0x1b   :  { %219 = vst [vmem:[%s534_s6 + $0x40] sm:$0xff] %v203_v52  ;;  %v75_v60 = vmul.f32 %v262_v54, %v354_v1  ;;  %v153_v61 = vmul.f32 %v294_v55, %v362_v4  ;;  %v265_v62 = vunpack.c.l.bf16 %v305_v50  ;;  %v297_v63 = vunpack.c.l.bf16 %v312_v51 }
  0x1c   :  { %220 = vst [vmem:[%s534_s6 + $0x48] sm:$0xff] %v204_v56  ;;  %v205_v0 = vmax.f32 %v189_v57, 0.0  ;;  %v190_v2 = vadd.f32 %v392_v25, %v167_v58  ;;  %v168_v3 = vadd.f32 %v152_v53, %v97_v59  ;;  %v266_v5 = vunpack.c.h.bf16 %v305_v50 }
  0x1d   :  { %v98_v7 = vadd.f32 %v367_v6, %v75_v60  ;;  %v76_v8 = vmul.f32 %v265_v62, %v354_v1  ;;  %v154_v9 = vmul.f32 %v297_v63, %v362_v4  ;;  %v298_v10 = vunpack.c.h.bf16 %v312_v51 }
  0x1e   :  { %221 = vst [vmem:[%s534_s6 + $0x50] sm:$0xff] %v205_v0  ;;  %v206_v11 = vmax.f32 %v190_v2, 0.0  ;;  %v191_v12 = vadd.f32 %v392_v25, %v168_v3  ;;  %v77_v13 = vmul.f32 %v266_v5, %v354_v1 }
  0x1f   :  { %v169_v14 = vadd.f32 %v153_v61, %v98_v7  ;;  %v99_v15 = vadd.f32 %v367_v6, %v76_v8  ;;  %v155_v16 = vmul.f32 %v298_v10, %v362_v4 }
  0x20   :  { %222 = vst [vmem:[%s534_s6 + $0x58] sm:$0xff] %v206_v11  ;;  %v207_v17 = vmax.f32 %v191_v12, 0.0  ;;  %v100_v18 = vadd.f32 %v367_v6, %v77_v13 }
  0x21   :  { %v192_v19 = vadd.f32 %v392_v25, %v169_v14  ;;  %v170_v20 = vadd.f32 %v154_v9, %v99_v15 }
  0x22   :  { %223 = vst [vmem:[%s534_s6 + $0x60] sm:$0xff] %v207_v17  ;;  %v171_v1 = vadd.f32 %v155_v16, %v100_v18 }
  0x23   :  { %v208_v21 = vmax.f32 %v192_v19, 0.0  ;;  %v193_v22 = vadd.f32 %v392_v25, %v170_v20 }
  0x24   :  { %v194_v4 = vadd.f32 %v392_v25, %v171_v1 }
  0x25   :  { %224 = vst [vmem:[%s534_s6 + $0x68] sm:$0xff] %v208_v21  ;;  %v209_v23 = vmax.f32 %v193_v22, 0.0 }
  0x26   :  { %v210_v24 = vmax.f32 %v194_v4, 0.0 }
  0x27   :  { %225 = vst [vmem:[%s534_s6 + $0x70] sm:$0xff] %v209_v23 }
  0x28   :  { %226 = vst [vmem:[%s534_s6 + $0x78] sm:$0xff] %v210_v24 }

// kernel: residual_block_forward.4
= control target key start
LH: loop header
LB: loop body
LE: loop exit
PB: predicated region body
PF: predicated region fallthrough
CT: control target
= control target key end

     0   :  { %s2477_s12 = smov 0   ;;  %s2479_s13 = smov 0   ;;  %s2749_s0 = inlined_call_operand.vmem [shape: bf16[6,2,72,4], index: 0, kind: input, shape index: {}]   ;;  %s2750_s1 = inlined_call_operand.vmem [shape: bf16[9,4,128], index: 1, kind: input, shape index: {}]   ;;  %s2751_s2 = inlined_call_operand.vmem [shape: bf16[2,64,128], index: 2, kind: output, shape index: {0}]   ;;  %s2752_s3 = inlined_call_operand.vmem [shape: f32[2,1,2,128], index: 3, kind: output, shape index: {1}]  }
   0x1   :  { %s2481_s14 = smov 0   ;;  %s2483_s15 = smov 0  }
   0x2   :  { %s2485_s16 = smov 0  }
   0x3 LB: > { %s26_s17 = sadd.s32 1, %s2451_s15  ;;  %p40_p1 = scmp.ne.s32.totalorder %s2443_s13, %s2439_s12  ;;  %s2455_s16 = sphi %s2485_s16, %s14_s16   ;;  %s2451_s15 = sphi %s2483_s15, %s2756_s15   ;;  %s2447_s14 = sphi %s2481_s14, %s2755_s14   ;;  %s2443_s13 = sphi %s2479_s13, %s2754_s13   ;;  %s2439_s12 = sphi %s2477_s12, %s2753_s12  }
   0x4   : > { %p28_p0 = scmp.ge.s32.totalorder %s26_s17, 2  ;;  %p41_p2 = scmp.eq.s32.totalorder %s2455_s16, 0 }
   0x5   : > { %s33_s19 = sadd.s32 1, %s2443_s13  ;;  %p1933_p5 = scmp.ge.s32.totalorder %s2455_s16, 2 }
   0x6   : > { %s2758_s17 = smov (%p28_p0, %s26_s17), 0  ;;  %p42_p3 = por %p41_p2, %p40_p1 }
   0x7   : > { %s30_s18 = ssub.s32 %s2451_s15, %s2758_s17  ;;  %146 = sbr.rel (%p1933_p5) target bundleno = 34 (0x22), region = 20 }
   0x8   : > { %p31_p4 = scmp.eq.s32.totalorder %s30_s18, 0 }
   0xa   : > { %s2512_s20 = scalar_select %p31_p4, %s2443_s13, %s33_s19  }
   0xe   : > { %149 = sbr.rel (!%p42_p3) target bundleno = 34 (0x22), region = 24  ;;  %s151_s21 = sand.u32 (%p42_p3), 1, %s2443_s13  }
   0xf   : > { %s2339_s22 = smul.u32 (%p42_p3), 36, %s2451_s15 }
  0x10   : > { %s2338_s23 = smul.u32 (%p42_p3), 216, %s151_s21 }
  0x11   : > { %s2520_s26 = scalar_lea.vmem (%p42_p3), %s2749_s0, %s2339_s22 }
  0x12   : > { %v172_v0 = vld [vmem:[%s2520_s26] sm:$0xff] (%p42_p3)   ;;  %v176_v1 = vld [vmem:[%s2520_s26 + $0x8] sm:$0xff] (%p42_p3)   ;;  %v180_v2 = vld [vmem:[%s2520_s26 + $0x10] sm:$0xff] (%p42_p3)   ;;  %s2525_s27 = scalar_lea.vmem (%p42_p3), [#allocation3], %s2338_s23 }
  0x13   : > { %173 = vst [vmem:[%s2525_s27] sm:$0xff] (%p42_p3), %v172_v0   ;;  %177 = vst [vmem:[%s2525_s27 + $0x8] sm:$0xff] (%p42_p3), %v176_v1   ;;  %v184_v3 = vld [vmem:[%s2520_s26 + $0x18] sm:$0xff] (%p42_p3)   ;;  %v188_v4 = vld [vmem:[%s2520_s26 + $0x20] sm:$0xf] (%p42_p3) }
  0x14   : > { %181 = vst [vmem:[%s2525_s27 + $0x10] sm:$0xff] (%p42_p3), %v180_v2   ;;  %v190_v5 = vld [vmem:[%s2520_s26 + $0x48] sm:$0xff] (%p42_p3)   ;;  %185 = vst [vmem:[%s2525_s27 + $0x18] sm:$0xff] (%p42_p3), %v184_v3   ;;  %v194_v6 = vld [vmem:[%s2520_s26 + $0x50] sm:$0xff] (%p42_p3)  }
  0x15   : > { %189 = vst [vmem:[%s2525_s27 + $0x20] sm:$0xf] %v188_v4  ;;  %191 = vst [vmem:[%s2525_s27 + $0x24] sm:$0xff] %v190_v5   ;;  %v198_v7 = vld [vmem:[%s2520_s26 + $0x58] sm:$0xff]   ;;  %v202_v8 = vld [vmem:[%s2520_s26 + $0x60] sm:$0xff]  }
  0x16   : > { %195 = vst [vmem:[%s2525_s27 + $0x2c] sm:$0xff] %v194_v6   ;;  %199 = vst [vmem:[%s2525_s27 + $0x34] sm:$0xff] %v198_v7   ;;  %v206_v9 = vld [vmem:[%s2520_s26 + $0x68] sm:$0xf]  ;;  %v208_v10 = vld [vmem:[%s2520_s26 + $0x90] sm:$0xff]  }
  0x17   : > { %203 = vst [vmem:[%s2525_s27 + $0x3c] sm:$0xff] %v202_v8   ;;  %v212_v11 = vld [vmem:[%s2520_s26 + $0x98] sm:$0xff]   ;;  %207 = vst [vmem:[%s2525_s27 + $0x44] sm:$0xf] %v206_v9  ;;  %v216_v12 = vld [vmem:[%s2520_s26 + $0xa0] sm:$0xff]  }
  0x18   : > { %209 = vst [vmem:[%s2525_s27 + $0x48] sm:$0xff] %v208_v10   ;;  %213 = vst [vmem:[%s2525_s27 + $0x50] sm:$0xff] %v212_v11   ;;  %v220_v13 = vld [vmem:[%s2520_s26 + $0xa8] sm:$0xff]   ;;  %v224_v14 = vld [vmem:[%s2520_s26 + $0xb0] sm:$0xf] }
  0x19   : > { %217 = vst [vmem:[%s2525_s27 + $0x58] sm:$0xff] %v216_v12   ;;  %221 = vst [vmem:[%s2525_s27 + $0x60] sm:$0xff] %v220_v13   ;;  %v226_v15 = vld [vmem:[%s2520_s26 + $0xd8] sm:$0xff]   ;;  %v230_v16 = vld [vmem:[%s2520_s26 + $0xe0] sm:$0xff]  }
  0x1a   : > { %225 = vst [vmem:[%s2525_s27 + $0x68] sm:$0xf] %v224_v14  ;;  %v234_v17 = vld [vmem:[%s2520_s26 + $0xe8] sm:$0xff]   ;;  %227 = vst [vmem:[%s2525_s27 + $0x6c] sm:$0xff] %v226_v15   ;;  %v238_v18 = vld [vmem:[%s2520_s26 + $0xf0] sm:$0xff]  }
  0x1b   : > { %231 = vst [vmem:[%s2525_s27 + $0x74] sm:$0xff] %v230_v16   ;;  %235 = vst [vmem:[%s2525_s27 + $0x7c] sm:$0xff] %v234_v17   ;;  %v242_v19 = vld [vmem:[%s2520_s26 + $0xf8] sm:$0xf]  ;;  %v244_v20 = vld [vmem:[%s2520_s26 + $0x120] sm:$0xff]  }
  0x1c   : > { %239 = vst [vmem:[%s2525_s27 + $0x84] sm:$0xff] %v238_v18   ;;  %243 = vst [vmem:[%s2525_s27 + $0x8c] sm:$0xf] %v242_v19  ;;  %v248_v21 = vld [vmem:[%s2520_s26 + $0x128] sm:$0xff]   ;;  %v252_v22 = vld [vmem:[%s2520_s26 + $0x130] sm:$0xff]  }
  0x1d   : > { %245 = vst [vmem:[%s2525_s27 + $0x90] sm:$0xff] %v244_v20   ;;  %v256_v23 = vld [vmem:[%s2520_s26 + $0x138] sm:$0xff]   ;;  %249 = vst [vmem:[%s2525_s27 + $0x98] sm:$0xff] %v248_v21   ;;  %v260_v24 = vld [vmem:[%s2520_s26 + $0x140] sm:$0xf] }
  0x1e   : > { %253 = vst [vmem:[%s2525_s27 + $0xa0] sm:$0xff] %v252_v22   ;;  %257 = vst [vmem:[%s2525_s27 + $0xa8] sm:$0xff] %v256_v23   ;;  %v262_v25 = vld [vmem:[%s2520_s26 + $0x168] sm:$0xff]   ;;  %v266_v26 = vld [vmem:[%s2520_s26 + $0x170] sm:$0xff]  }
  0x1f   : > { %261 = vst [vmem:[%s2525_s27 + $0xb0] sm:$0xf] %v260_v24  ;;  %263 = vst [vmem:[%s2525_s27 + $0xb4] sm:$0xff] %v262_v25   ;;  %v270_v27 = vld [vmem:[%s2520_s26 + $0x178] sm:$0xff]   ;;  %v274_v28 = vld [vmem:[%s2520_s26 + $0x180] sm:$0xff]  }
  0x20   : > { %267 = vst [vmem:[%s2525_s27 + $0xbc] sm:$0xff] %v266_v26   ;;  %v278_v29 = vld [vmem:[%s2520_s26 + $0x188] sm:$0xf]  ;;  %271 = vst [vmem:[%s2525_s27 + $0xc4] sm:$0xff] %v270_v27  }
  0x21   : > { %275 = vst [vmem:[%s2525_s27 + $0xcc] sm:$0xff] %v274_v28   ;;  %279 = vst [vmem:[%s2525_s27 + $0xd4] sm:$0xf] %v278_v29 }
  0x22 PF: > { %p1935_p6 = scmp.ge.s32.totalorder %s2455_s16, 1  ;;  %p409_p7 = scmp.lt.s32.totalorder %s2455_s16, 3 }
  0x24   : > { %p410_p8 = pnand %p1935_p6, %p409_p7 }
  0x25   : > { %v481_v30 = vld [vmem:[%s2750_s1] sm:$0x3] (!%p410_p8)  ;;  %vm515_vm0 = vcmask (!%p410_p8), 1041408   ;;  %v2592_v31 = vld [vmem:[%s2750_s1 + $0x8] sm:$0x3] (!%p410_p8)  ;;  %s416_s5 = sand.u32 (!%p410_p8), 1, %s2439_s12  }
  0x26   : > { %413 = sbr.rel (%p410_p8) target bundleno = 351 (0x15f), region = 65  ;;  %2328 = vmatprep.subr.msk.bf16.mxu1 (!%p410_p8), %vm515_vm0, %v481_v30  ;;  %2332 = vmatprep.subr.msk.bf16.mxu0 (!%p410_p8), %vm515_vm0, %v2592_v31  ;;  %v517_v32 = vsel (!%p410_p8), %vm515_vm0, %v481_v30, 0  ;;  %v2601_v33 = vsel (!%p410_p8), %vm515_vm0, %v2592_v31, 0  ;;  %v1955_v34 = vld [vmem:[%s2750_s1 + $0x2] sm:$0x3] (!%p410_p8)  ;;  %vm502_vm1 = vcmask (!%p410_p8), 31744  }
  0x27   : > { %s2340_s6 = smul.u32 (!%p410_p8), 216, %s416_s5  ;;  %2173 = vmatpush3.bf16.msra.mxu1 (!%p410_p8), %v517_v32  ;;  %2213 = vmatpush3.bf16.msra.mxu0 (!%p410_p8), %v2601_v33  ;;  %v2023_v35 = vld [vmem:[%s2750_s1 + $0xa] sm:$0x3] (!%p410_p8)  ;;  %v638_v39 = vsel (!%p410_p8), %vm515_vm0, %v1955_v34, 0  ;;  %v2040_v40 = vld [vmem:[%s2750_s1 + $0xc] sm:$0x3] (!%p410_p8) }
  0x28   : > { %2329 = vmatprep.subr.msk.bf16.mxu1 (!%p410_p8), %vm515_vm0, %v1955_v34  ;;  %2334 = vmatprep.subr.msk.bf16.mxu0 (!%p410_p8), %vm515_vm0, %v2023_v35  ;;  %v1972_v41 = vld [vmem:[%s2750_s1 + $0x4] sm:$0x3] (!%p410_p8)  ;;  %v1186_v43 = vsel (!%p410_p8), %vm515_vm0, %v2023_v35, 0  ;;  %v1327_v50 = vsel (!%p410_p8), %vm515_vm0, %v2040_v40, 0  ;;  %v2058_v52 = vld [vmem:[%s2750_s1 + $0xe] sm:$0x3] (!%p410_p8) }
  0x29   : > { %s2612_s11 = scalar_lea.vmem (!%p410_p8), [#allocation3], %s2340_s6  ;;  %v775_v54 = vsel (!%p410_p8), %vm515_vm0, %v1972_v41, 0  ;;  %v1989_v55 = vld [vmem:[%s2750_s1 + $0x6] sm:$0x3] (!%p410_p8)  ;;  %v1464_v62 = vsel (!%p410_p8), %vm515_vm0, %v2058_v52, 0  ;;  %p451_p9 = scmp.lt.s32.totalorder (!%p410_p8), %s2447_s14, 1 }
  0x2a   : > { %v2381_v36 = vld [vmem:[%s2612_s11] sm:$0xff] (!%p410_p8)   ;;  %v2382_v37 = vld [vmem:[%s2612_s11 + $0x6c] sm:$0xff] (!%p410_p8)   ;;  %v2384_v42 = vld [vmem:[%s2612_s11 + $0x74] sm:$0xff] (!%p410_p8)   ;;  %v912_v2 = vsel (!%p410_p8), %vm515_vm0, %v1989_v55, 0  ;;  %vm1774_vm2 = vcmask (!%p410_p8), 1040384  }
  0x2b   : > { %2174 = vmatprep.mubr.msk.bf16.mxu1 (!%p410_p8), %vm502_vm1, %v2381_v36  ;;  %v2383_v38 = vld [vmem:[%s2612_s11 + $0x8] sm:$0xff] (!%p410_p8)   ;;  %2214 = vmatprep.mubr.msk.bf16.mxu0 (!%p410_p8), %vm502_vm1, %v2382_v37  ;;  %v2385_v44 = vld [vmem:[%s2612_s11 + $0x10] sm:$0xff] (!%p410_p8)   ;;  %v2386_v46 = vld [vmem:[%s2612_s11 + $0x18] sm:$0xff] (!%p410_p8)  }
  0x2c   : > { %2175 = vmatmul.mubr.msk.bf16.vlgmr.msra.gmra.mrb[0].mxu1 (!%p410_p8), %vm502_vm1, %v2383_v38  ;;  %2215 = vmatmul.mubr.msk.bf16.vlgmr.msra.gmra.mrb[0].mxu0 (!%p410_p8), %vm502_vm1, %v2384_v42  ;;  %v2387_v45 = vld [vmem:[%s2612_s11 + $0xb4] sm:$0xff] (!%p410_p8)   ;;  %v2389_v47 = vld [vmem:[%s2612_s11 + $0x48] sm:$0xff] (!%p410_p8)   ;;  %v2388_v48 = vld [vmem:[%s2612_s11 + $0xbc] sm:$0xff] (!%p410_p8)  }
  0x2d   : > { %2183 = vmatpush3.bf16.msra.mxu1 %v638_v39  ;;  %2223 = vmatpush3.bf16.msra.mxu0 %v1186_v43  ;;  %v2391_v49 = vld [vmem:[%s2612_s11 + $0xc4] sm:$0xff]   ;;  %v2390_v51 = vld [vmem:[%s2612_s11 + $0x50] sm:$0xff]   ;;  %v2393_v53 = vld [vmem:[%s2612_s11 + $0x58] sm:$0xff]   ;;  %s2760_s14 = smov (!%p451_p9, %s2447_s14), 1 }
  0x2e   : > { %2178 = vmatprep.mubr.msk.bf16.mxu1 %vm502_vm1, %v2385_v44  ;;  %2335 = vmatprep.subr.msk.bf16.mxu0 %vm515_vm0, %v2040_v40  ;;  %v2392_v56 = vld [vmem:[%s2612_s11 + $0xcc] sm:$0xff]   ;;  %v2395_v57 = vld [vmem:[%s2612_s11 + $0x4] sm:$0xff]   ;;  %v2399_v61 = vld [vmem:[%s2612_s11 + $0x14] sm:$0xff]   ;;  %s2095_s28 = sshll.u32 %s2760_s14, 5  ;;  %s1938_s5 = sshll.u32 %s2760_s14, 1 }
  0x2f   : > { %2330 = vmatprep.subr.msk.bf16.mxu1 %vm515_vm0, %v1972_v41  ;;  %2224 = vmatprep.mubr.msk.bf16.mxu0 %vm502_vm1, %v2387_v45  ;;  %v2394_v58 = vld [vmem:[%s2612_s11 + $0x60] sm:$0xff]   ;;  %v2397_v59 = vld [vmem:[%s2612_s11 + $0x90] sm:$0xff]   ;;  %v2398_v63 = vld [vmem:[%s2612_s11 + $0x98] sm:$0xff]   ;;  %s2724_s4 = scalar_lea.vmem %s2751_s2, %s2095_s28  ;;  %s466_s8 = scalar_lea.vmem %s2752_s3, %s1938_s5 }
  0x30   : > { %v2396_v60 = vld [vmem:[%s2612_s11 + $0xc] sm:$0xff]   ;;  %v2401_v1 = vld [vmem:[%s2612_s11 + $0xa0] sm:$0xff]   ;;  %v2404_v7 = vld [vmem:[%s2612_s11 + $0x54] sm:$0xff]  }
  0x31   : > { %v2076_v0 = vld [vmem:[%s2750_s1 + $0x10] sm:$0x3]  ;;  %v2400_v3 = vld [vmem:[%s2612_s11 + $0x1c] sm:$0xff]   ;;  %v2402_v5 = vld [vmem:[%s2612_s11 + $0xa8] sm:$0xff]  }
  0x32   : > { %v2403_v4 = vld [vmem:[%s2612_s11 + $0x4c] sm:$0xff]   ;;  %v2405_v6 = vld [vmem:[%s2612_s11 + $0x24] sm:$0xff]   ;;  %v2407_v8 = vld [vmem:[%s2612_s11 + $0x5c] sm:$0xff]   ;;  %v1601_v9 = vsel %vm515_vm0, %v2076_v0, 0 }
  0x33   : > { %v2406_v10 = vld [vmem:[%s2612_s11 + $0x2c] sm:$0xff]   ;;  %v2409_v11 = vld [vmem:[%s2612_s11 + $0x34] sm:$0xff]   ;;  %v2408_v12 = vld [vmem:[%s2612_s11 + $0x64] sm:$0xff]  }
  0x34   : > { %2179 = vmatmul.mubr.msk.bf16.gmra.mrb[4].mxu1 %vm502_vm1, %v2386_v46  ;;  %v2411_v13 = vld [vmem:[%s2612_s11 + $0x94] sm:$0xff]   ;;  %v2410_v14 = vld [vmem:[%s2612_s11 + $0x3c] sm:$0xff]   ;;  %v2414_v17 = vld [vmem:[%s2612_s11 + $0xa4] sm:$0xff]  }
  0x35   : > { %2184 = vmatprep.mubr.msk.bf16.mxu1 %vm502_vm1, %v2389_v47  ;;  %v2413_v15 = vld [vmem:[%s2612_s11 + $0x7c] sm:$0xff]   ;;  %v2415_v18 = vld [vmem:[%s2612_s11 + $0x84] sm:$0xff]   ;;  %v2416_v19 = vld [vmem:[%s2612_s11 + $0xac] sm:$0xff]  }
  0x36   : > { %v2412_v16 = vld [vmem:[%s2612_s11 + $0x9c] sm:$0xff]  }
  0x38   : > { %2225 = vmatmul.mubr.msk.bf16.vlgmr.msra.gmra.mrb[0].mxu0 %vm502_vm1, %v2388_v48 }
  0x39   : > { %2233 = vmatpush3.bf16.msra.mxu0 %v1327_v50  ;;  %2228 = vmatprep.mubr.msk.bf16.mxu0 %vm502_vm1, %v2391_v49 }
  0x3a   : > { %2336 = vmatprep.subr.msk.bf16.mxu0 %vm515_vm0, %v2058_v52 }
  0x3c   : > { %2185 = vmatmul.mubr.msk.bf16.vlgmr.msra.gmra.mrb[0].mxu1 %vm502_vm1, %v2390_v51 }
  0x3d   : > { %2193 = vmatpush3.bf16.msra.mxu1 %v775_v54  ;;  %2188 = vmatprep.mubr.msk.bf16.mxu1 %vm502_vm1, %v2393_v53 }
  0x3e   : > { %2331 = vmatprep.subr.msk.bf16.mxu1 %vm515_vm0, %v1989_v55 }
  0x40   : > { %2229 = vmatmul.mubr.msk.bf16.gmra.mrb[4].mxu0 %vm502_vm1, %v2392_v56 }
  0x41   : > { %2234 = vmatprep.mubr.msk.bf16.mxu0 %vm502_vm1, %v2395_v57 }
  0x44   : > { %2189 = vmatmul.mubr.msk.bf16.gmra.mrb[4].mxu1 %vm502_vm1, %v2394_v58 }
  0x45   : > { %2194 = vmatprep.mubr.msk.bf16.mxu1 %vm502_vm1, %v2397_v59 }
  0x48   : > { %2235 = vmatmul.mubr.msk.bf16.vlgmr.msra.gmra.mrb[0].mxu0 %vm502_vm1, %v2396_v60 }
  0x49   : > { %2243 = vmatpush3.bf16.msra.mxu0 %v1464_v62  ;;  %2238 = vmatprep.mubr.msk.bf16.mxu0 %vm502_vm1, %v2399_v61 }
  0x4a   : > { %2337 = vmatprep.subr.msk.bf16.mxu0 %vm515_vm0, %v2076_v0 }
  0x4c   : > { %2195 = vmatmul.mubr.msk.bf16.vlgmr.msra.gmra.mrb[0].mxu1 %vm502_vm1, %v2398_v63 }
  0x4d   : > { %2203 = vmatpush3.bf16.msra.mxu1 %v912_v2  ;;  %2198 = vmatprep.mubr.msk.bf16.mxu1 %vm502_vm1, %v2401_v1 }
  0x4e   : > { %2333 = vmatprep.subr.msk.bf16.mxu1 %vm515_vm0, %v2592_v31 }
  0x50   : > { %2239 = vmatmul.mubr.msk.bf16.gmra.mrb[4].mxu0 %vm502_vm1, %v2400_v3 }
  0x51   : > { %2244 = vmatprep.mubr.msk.bf16.mxu0 %vm502_vm1, %v2403_v4 }
  0x54   : > { %2199 = vmatmul.mubr.msk.bf16.gmra.mrb[4].mxu1 %vm502_vm1, %v2402_v5 }
  0x55   : > { %2204 = vmatprep.mubr.msk.bf16.mxu1 %vm502_vm1, %v2405_v6 }
  0x58   : > { %2245 = vmatmul.mubr.msk.bf16.vlgmr.msra.gmra.mrb[0].mxu0 %vm502_vm1, %v2404_v7 }
  0x59   : > { %2253 = vmatpush3.bf16.msra.mxu0 %v1601_v9  ;;  %2248 = vmatprep.mubr.msk.bf16.mxu0 %vm502_vm1, %v2407_v8 }
  0x5c   : > { %2205 = vmatmul.mubr.msk.bf16.vlgmr.msra.gmra.mrb[0].mxu1 %vm502_vm1, %v2406_v10 }
  0x5d   : > { %2263 = vmatpush3.bf16.msra.mxu1 %v2601_v33  ;;  %2208 = vmatprep.mubr.msk.bf16.mxu1 %vm502_vm1, %v2409_v11 }
  0x60   : > { %2249 = vmatmul.mubr.msk.bf16.gmra.mrb[4].mxu0 %vm502_vm1, %v2408_v12 }
  0x61   : > { %2254 = vmatprep.mubr.msk.bf16.mxu0 %vm502_vm1, %v2411_v13 }
  0x64   : > { %2209 = vmatmul.mubr.msk.bf16.gmra.mrb[4].mxu1 %vm502_vm1, %v2410_v14 }
  0x65   : > { %2218 = vmatprep.mubr.msk.bf16.mxu1 %vm502_vm1, %v2413_v15 }
  0x68   : > { %2255 = vmatmul.mubr.msk.bf16.vlgmr.msra.gmra.mrb[0].mxu0 %vm502_vm1, %v2412_v16 }
  0x69   : > { %2258 = vmatprep.mubr.msk.bf16.mxu0 %vm502_vm1, %v2414_v17 }
  0x70   : > { %2219 = vmatmul.mubr.msk.bf16.vlgmr.msra.gmra.mrb[4].mxu1 %vm502_vm1, %v2415_v18  ;;  %2259 = vmatmul.mubr.msk.bf16.gmra.mrb[4].mxu0 %vm502_vm1, %v2416_v19 }
 0x12f   : > { %v2206_v20 = vpop.f32.mrb[0].mxu1 }
 0x130   : > { %v948_v21 = vpop.f32.mrb[1].mxu1 }
 0x131   : > { %v2207_v22 = vpop.f32.mrb[2].mxu1 }
 0x132   : > { %v951_v23 = vpop.f32.mrb[3].mxu1 }
 0x13b   : > { %v2256_v24 = vpop.f32.mrb[0].mxu0 }
 0x13c   : > { %v2264_v25 = vadd.f32 %v2256_v24, %v2206_v20  ;;  %v1637_v26 = vpop.f32.mrb[1].mxu0 }
 0x13d   : > { %v2265_v27 = vadd.f32 %v1637_v26, %v948_v21  ;;  %v2257_v28 = vpop.f32.mrb[2].mxu0 }
 0x13e   : > { %v2266_v29 = vadd.f32 %v2257_v28, %v2207_v22  ;;  %v1640_v30 = vpop.f32.mrb[3].mxu0  ;;  %v1755_v38 = vmul.f32 %v2264_v25, %v2264_v25 }
 0x13f   : > { %v2267_v31 = vadd.f32 %v1640_v30, %v951_v23  ;;  %v1753_v33 = vmul.f32 %v2265_v27, %v2265_v27 }
 0x140   : > { %v2112_v32 = vpack.c.bf16 %v2266_v29, %v2264_v25  ;;  %v1756_v46 = vmul.f32 %v2266_v29, %v2266_v29 }
 0x141   : > { %v2107_v34 = vpack.c.bf16 %v2267_v31, %v2265_v27  ;;  %v1740_v35 = vadd.f32 %v2267_v31, %v2265_v27  ;;  %v1754_v36 = vmul.f32 %v2267_v31, %v2267_v31 }
 0x142   : > { %2124 = vst [vmem:[%s2724_s4 + $0x8] sm:$0xff] %v2112_v32  }
 0x143   : > { %v2220_v37 = vpop.f32.mrb[4].mxu1  ;;  %2108 = vst [vmem:[%s2724_s4] sm:$0xff] %v2107_v34   ;;  %v1741_v39 = vadd.f32 %v2264_v25, %v1740_v35  ;;  %v1761_v40 = vadd.f32 %v1754_v36, %v1753_v33  ;;  %v2260_v41 = vpop.f32.mrb[4].mxu0 }
 0x144   : > { %v1101_v42 = vpop.f32.mrb[5].mxu1  ;;  %v2268_v43 = vadd.f32 %v2260_v41, %v2220_v37  ;;  %v1653_v44 = vpop.f32.mrb[5].mxu0 }
 0x145   : > { %v2221_v45 = vpop.f32.mrb[6].mxu1  ;;  %v1762_v47 = vadd.f32 %v1761_v40, %v1755_v38  ;;  %v2269_v48 = vadd.f32 %v1653_v44, %v1101_v42  ;;  %v1742_v49 = vadd.f32 %v2266_v29, %v1741_v39  ;;  %v2261_v50 = vpop.f32.mrb[6].mxu0 }
 0x146   : > { %v1104_v51 = vpop.f32.mrb[7].mxu1  ;;  %v2270_v52 = vadd.f32 %v2261_v50, %v2221_v45  ;;  %v1656_v53 = vpop.f32.mrb[7].mxu0  ;;  %v1759_v63 = vmul.f32 %v2268_v43, %v2268_v43 }
 0x147   : > { %v1743_v54 = vadd.f32 %v2269_v48, %v1742_v49  ;;  %v1757_v55 = vmul.f32 %v2269_v48, %v2269_v48  ;;  %v1763_v56 = vadd.f32 %v1762_v47, %v1756_v46  ;;  %v2271_v57 = vadd.f32 %v1656_v53, %v1104_v51 }
 0x148   : > { %v2122_v58 = vpack.c.bf16 %v2270_v52, %v2268_v43  ;;  %v1760_v2 = vmul.f32 %v2270_v52, %v2270_v52 }
 0x149   : > { %v1764_v59 = vadd.f32 %v1763_v56, %v1757_v55  ;;  %v2117_v60 = vpack.c.bf16 %v2271_v57, %v2269_v48  ;;  %v1744_v61 = vadd.f32 %v2271_v57, %v1743_v54  ;;  %v1758_v62 = vmul.f32 %v2271_v57, %v2271_v57 }
 0x14a   : > { %2126 = vst [vmem:[%s2724_s4 + $0x18] sm:$0xff] %v2122_v58  }
 0x14b   : > { %2125 = vst [vmem:[%s2724_s4 + $0x10] sm:$0xff] %v2117_v60   ;;  %v1745_v0 = vadd.f32 %v2268_v43, %v1744_v61  ;;  %v1765_v1 = vadd.f32 %v1764_v59, %v1758_v62 }
 0x14d   : > { %v1746_v3 = vadd.f32 %v2270_v52, %v1745_v0  ;;  %v1766_v4 = vadd.f32 %v1765_v1, %v1759_v63 }
 0x14f   : > { %v1747_v5 = vrot.slane %v1746_v3, 4  ;;  %v1767_v6 = vadd.f32 %v1766_v4, %v1760_v2 }
 0x151   : > { %v1748_v7 = vadd.f32 %v1747_v5, %v1746_v3  ;;  %v1768_v8 = vrot.slane %v1767_v6, 4 }
 0x153   : > { %v1749_v9 = vrot.slane %v1748_v7, 2  ;;  %v1769_v10 = vadd.f32 %v1768_v8, %v1767_v6 }
 0x155   : > { %v1750_v11 = vadd.f32 %v1749_v9, %v1748_v7  ;;  %v1770_v12 = vrot.slane %v1769_v10, 2 }
 0x157   : > { %v1751_v13 = vrot.slane %v1750_v11, 1  ;;  %v1771_v14 = vadd.f32 %v1770_v12, %v1769_v10 }
 0x159   : > { %v1772_v15 = vrot.slane %v1771_v14, 1  ;;  %v1752_v16 = vadd.f32 %v1751_v13, %v1750_v11 }
 0x15b   : > { %v1773_v17 = vadd.f32 %v1772_v15, %v1771_v14 }
 0x15d   : > { %v1775_v18 = vsel %vm1774_vm2, %v1752_v16, %v1773_v17 }
 0x15e   : > { %1776 = vst [vmem:[%s466_s8] sm:$0x3] %v1775_v18 }
 0x15f PF: > { %s14_s16 = sadd.s32 1, %s2455_s16   ;;  %s2753_s12 = smov %s2443_s13 }
 0x160   : > { %p11_p10 = scmp.ge.s32.totalorder %s14_s16, 4   ;;  %s2754_s13 = smov %s2512_s20 }
 0x161   : > { %s2755_s14 = smov %s2451_s15  ;;  %s2756_s15 = smov %s2758_s17 }
 0x162   :  { %13 = sbr.rel (!%p11_p10) target bundleno = 3 (0x3), region = 133 }

// kernel: residual_block_forward.5
= control target key start
LH: loop header
LB: loop body
LE: loop exit
PB: predicated region body
PF: predicated region fallthrough
CT: control target
= control target key end

     0   :  { %s2385_s12 = smov 0   ;;  %s2387_s13 = smov 0   ;;  %s2593_s0 = inlined_call_operand.vmem [shape: bf16[3,2,80,8], index: 0, kind: input, shape index: {}]   ;;  %s2594_s1 = inlined_call_operand.vmem [shape: bf16[9,8,128], index: 1, kind: input, shape index: {}]   ;;  %s2595_s2 = inlined_call_operand.vmem [shape: bf16[2,64,128], index: 2, kind: output, shape index: {0}]   ;;  %s2596_s3 = inlined_call_operand.vmem [shape: f32[2,1,2,128], index: 3, kind: output, shape index: {1}]  }
   0x1   :  { %s2389_s14 = smov 0   ;;  %s2391_s15 = smov 0  }
   0x2   :  { %s2393_s16 = smov 0  }
   0x3 LB: > { %s26_s17 = sadd.s32 1, %s2359_s15  ;;  %p40_p1 = scmp.ne.s32.totalorder %s2351_s13, %s2347_s12  ;;  %s2363_s16 = sphi %s2393_s16, %s14_s16   ;;  %s2359_s15 = sphi %s2391_s15, %s2600_s15   ;;  %s2355_s14 = sphi %s2389_s14, %s2599_s14   ;;  %s2351_s13 = sphi %s2387_s13, %s2598_s13   ;;  %s2347_s12 = sphi %s2385_s12, %s2597_s12  }
   0x4   : > { %p28_p0 = scmp.ge.s32.totalorder %s26_s17, 2  ;;  %p41_p2 = scmp.eq.s32.totalorder %s2363_s16, 0 }
   0x5   : > { %s33_s19 = sadd.s32 1, %s2351_s13  ;;  %p1839_p5 = scmp.ge.s32.totalorder %s2363_s16, 2 }
   0x6   : > { %s2602_s17 = smov (%p28_p0, %s26_s17), 0  ;;  %p42_p3 = por %p41_p2, %p40_p1 }
   0x7   : > { %s30_s18 = ssub.s32 %s2359_s15, %s2602_s17  ;;  %146 = sbr.rel (%p1839_p5) target bundleno = 27 (0x1b), region = 20 }
   0x8   : > { %p31_p4 = scmp.eq.s32.totalorder %s30_s18, 0 }
   0xa   : > { %s2420_s20 = scalar_select %p31_p4, %s2351_s13, %s33_s19  }
   0xe   : > { %149 = sbr.rel (!%p42_p3) target bundleno = 27 (0x1b), region = 24  ;;  %s151_s21 = sand.u32 (%p42_p3), 1, %s2351_s13  }
   0xf   : > { %s2247_s22 = smul.u32 (%p42_p3), 40, %s2359_s15 }
  0x10   : > { %s2246_s23 = smul.u32 (%p42_p3), 120, %s151_s21 }
  0x11   : > { %s156_s26 = scalar_lea.vmem (%p42_p3), %s2593_s0, %s2247_s22 }
  0x12   : > { %v172_v0 = vld [vmem:[%s156_s26] sm:$0xff] (%p42_p3)   ;;  %v176_v1 = vld [vmem:[%s156_s26 + $0x8] sm:$0xff] (%p42_p3)   ;;  %v180_v2 = vld [vmem:[%s156_s26 + $0x10] sm:$0xff] (%p42_p3)   ;;  %s153_s27 = scalar_lea.vmem (%p42_p3), [#allocation3], %s2246_s23 }
  0x13   : > { %173 = vst [vmem:[%s153_s27] sm:$0xff] (%p42_p3), %v172_v0   ;;  %177 = vst [vmem:[%s153_s27 + $0x8] sm:$0xff] (%p42_p3), %v176_v1   ;;  %v184_v3 = vld [vmem:[%s156_s26 + $0x18] sm:$0xff] (%p42_p3)   ;;  %v188_v4 = vld [vmem:[%s156_s26 + $0x20] sm:$0xff] (%p42_p3)  }
  0x14   : > { %181 = vst [vmem:[%s153_s27 + $0x10] sm:$0xff] (%p42_p3), %v180_v2   ;;  %v192_v5 = vld [vmem:[%s156_s26 + $0x50] sm:$0xff] (%p42_p3)   ;;  %185 = vst [vmem:[%s153_s27 + $0x18] sm:$0xff] (%p42_p3), %v184_v3   ;;  %v196_v6 = vld [vmem:[%s156_s26 + $0x58] sm:$0xff] (%p42_p3)  }
  0x15   : > { %189 = vst [vmem:[%s153_s27 + $0x20] sm:$0xff] %v188_v4   ;;  %193 = vst [vmem:[%s153_s27 + $0x28] sm:$0xff] %v192_v5   ;;  %v200_v7 = vld [vmem:[%s156_s26 + $0x60] sm:$0xff]   ;;  %v204_v8 = vld [vmem:[%s156_s26 + $0x68] sm:$0xff]  }
  0x16   : > { %197 = vst [vmem:[%s153_s27 + $0x30] sm:$0xff] %v196_v6   ;;  %201 = vst [vmem:[%s153_s27 + $0x38] sm:$0xff] %v200_v7   ;;  %v208_v9 = vld [vmem:[%s156_s26 + $0x70] sm:$0xff]   ;;  %v212_v10 = vld [vmem:[%s156_s26 + $0xa0] sm:$0xff]  }
  0x17   : > { %205 = vst [vmem:[%s153_s27 + $0x40] sm:$0xff] %v204_v8   ;;  %v216_v11 = vld [vmem:[%s156_s26 + $0xa8] sm:$0xff]   ;;  %209 = vst [vmem:[%s153_s27 + $0x48] sm:$0xff] %v208_v9   ;;  %v220_v12 = vld [vmem:[%s156_s26 + $0xb0] sm:$0xff]  }
  0x18   : > { %213 = vst [vmem:[%s153_s27 + $0x50] sm:$0xff] %v212_v10   ;;  %217 = vst [vmem:[%s153_s27 + $0x58] sm:$0xff] %v216_v11   ;;  %v224_v13 = vld [vmem:[%s156_s26 + $0xb8] sm:$0xff]   ;;  %v228_v14 = vld [vmem:[%s156_s26 + $0xc0] sm:$0xff]  }
  0x19   : > { %221 = vst [vmem:[%s153_s27 + $0x60] sm:$0xff] %v220_v12   ;;  %225 = vst [vmem:[%s153_s27 + $0x68] sm:$0xff] %v224_v13  }
  0x1a   : > { %229 = vst [vmem:[%s153_s27 + $0x70] sm:$0xff] %v228_v14  }
  0x1b PF: > { %p1841_p6 = scmp.ge.s32.totalorder %s2363_s16, 1  ;;  %p313_p7 = scmp.lt.s32.totalorder %s2363_s16, 3 }
  0x1d   : > { %p314_p8 = pnand %p1841_p6, %p313_p7 }
  0x1e   : > { %v385_v15 = vld [vmem:[%s2594_s1] sm:$0xf] (!%p314_p8)  ;;  %vm419_vm0 = vcmask (!%p314_p8), 1043456   ;;  %v2436_v16 = vld [vmem:[%s2594_s1 + $0x10] sm:$0xf] (!%p314_p8)  ;;  %s320_s5 = sand.u32 (!%p314_p8), 1, %s2347_s12  }
  0x1f   : > { %317 = sbr.rel (%p314_p8) target bundleno = 344 (0x158), region = 65  ;;  %2236 = vmatprep.subr.msk.bf16.mxu1 (!%p314_p8), %vm419_vm0, %v385_v15  ;;  %2240 = vmatprep.subr.msk.bf16.mxu0 (!%p314_p8), %vm419_vm0, %v2436_v16  ;;  %v421_v17 = vsel (!%p314_p8), %vm419_vm0, %v385_v15, 0  ;;  %v2445_v18 = vsel (!%p314_p8), %vm419_vm0, %v2436_v16, 0  ;;  %v1861_v19 = vld [vmem:[%s2594_s1 + $0x4] sm:$0xf] (!%p314_p8)  ;;  %vm406_vm1 = vcmask (!%p314_p8), 64512  }
  0x20   : > { %s2248_s6 = smul.u32 (!%p314_p8), 120, %s320_s5  ;;  %2081 = vmatpush3.bf16.msra.mxu1 (!%p314_p8), %v421_v17  ;;  %2121 = vmatpush3.bf16.msra.mxu0 (!%p314_p8), %v2445_v18  ;;  %v1931_v20 = vld [vmem:[%s2594_s1 + $0x14] sm:$0xf] (!%p314_p8)  ;;  %v542_v24 = vsel (!%p314_p8), %vm419_vm0, %v1861_v19, 0  ;;  %v1948_v25 = vld [vmem:[%s2594_s1 + $0x18] sm:$0xf] (!%p314_p8) }
  0x21   : > { %2237 = vmatprep.subr.msk.bf16.mxu1 (!%p314_p8), %vm419_vm0, %v1861_v19  ;;  %2242 = vmatprep.subr.msk.bf16.mxu0 (!%p314_p8), %vm419_vm0, %v1931_v20  ;;  %v1878_v26 = vld [vmem:[%s2594_s1 + $0x8] sm:$0xf] (!%p314_p8)  ;;  %v1094_v28 = vsel (!%p314_p8), %vm419_vm0, %v1931_v20, 0  ;;  %v1234_v35 = vsel (!%p314_p8), %vm419_vm0, %v1948_v25, 0  ;;  %v1966_v37 = vld [vmem:[%s2594_s1 + $0x1c] sm:$0xf] (!%p314_p8) }
  0x22   : > { %s2456_s11 = scalar_lea.vmem (!%p314_p8), [#allocation3], %s2248_s6  ;;  %v679_v39 = vsel (!%p314_p8), %vm419_vm0, %v1878_v26, 0  ;;  %v1895_v40 = vld [vmem:[%s2594_s1 + $0xc] sm:$0xf] (!%p314_p8)  ;;  %v1371_v47 = vsel (!%p314_p8), %vm419_vm0, %v1966_v37, 0  ;;  %p355_p9 = scmp.lt.s32.totalorder (!%p314_p8), %s2355_s14, 1 }
  0x23   : > { %v2289_v21 = vld [vmem:[%s2456_s11] sm:$0xff] (!%p314_p8)   ;;  %v2290_v22 = vld [vmem:[%s2456_s11 + $0x2c] sm:$0xff] (!%p314_p8)   ;;  %v2292_v27 = vld [vmem:[%s2456_s11 + $0x34] sm:$0xff] (!%p314_p8)   ;;  %v820_v51 = vsel (!%p314_p8), %vm419_vm0, %v1895_v40, 0  ;;  %vm1681_vm2 = vcmask (!%p314_p8), 1040384  }
  0x24   : > { %2082 = vmatprep.mubr.msk.bf16.mxu1 (!%p314_p8), %vm406_vm1, %v2289_v21  ;;  %v2291_v23 = vld [vmem:[%s2456_s11 + $0x8] sm:$0xff] (!%p314_p8)   ;;  %2122 = vmatprep.mubr.msk.bf16.mxu0 (!%p314_p8), %vm406_vm1, %v2290_v22  ;;  %v2293_v29 = vld [vmem:[%s2456_s11 + $0x10] sm:$0xff] (!%p314_p8)   ;;  %v2294_v31 = vld [vmem:[%s2456_s11 + $0x18] sm:$0xff] (!%p314_p8)  }
  0x25   : > { %2083 = vmatmul.mubr.msk.bf16.vlgmr.msra.gmra.mrb[0].mxu1 (!%p314_p8), %vm406_vm1, %v2291_v23  ;;  %2123 = vmatmul.mubr.msk.bf16.vlgmr.msra.gmra.mrb[0].mxu0 (!%p314_p8), %vm406_vm1, %v2292_v27  ;;  %v2295_v30 = vld [vmem:[%s2456_s11 + $0x54] sm:$0xff] (!%p314_p8)   ;;  %v2297_v32 = vld [vmem:[%s2456_s11 + $0x28] sm:$0xff] (!%p314_p8)   ;;  %v2296_v33 = vld [vmem:[%s2456_s11 + $0x5c] sm:$0xff] (!%p314_p8)  }
  0x26   : > { %2091 = vmatpush3.bf16.msra.mxu1 %v542_v24  ;;  %2131 = vmatpush3.bf16.msra.mxu0 %v1094_v28  ;;  %v2299_v34 = vld [vmem:[%s2456_s11 + $0x64] sm:$0xff]   ;;  %v2298_v36 = vld [vmem:[%s2456_s11 + $0x30] sm:$0xff]   ;;  %v2301_v38 = vld [vmem:[%s2456_s11 + $0x38] sm:$0xff]   ;;  %s2604_s14 = smov (!%p355_p9, %s2355_s14), 1 }
  0x27   : > { %2086 = vmatprep.mubr.msk.bf16.mxu1 %vm406_vm1, %v2293_v29  ;;  %2243 = vmatprep.subr.msk.bf16.mxu0 %vm419_vm0, %v1948_v25  ;;  %v2300_v41 = vld [vmem:[%s2456_s11 + $0x6c] sm:$0xff]   ;;  %v2302_v43 = vld [vmem:[%s2456_s11 + $0x40] sm:$0xff]   ;;  %v2307_v46 = vld [vmem:[%s2456_s11 + $0x18] sm:$0xff]   ;;  %s2003_s28 = sshll.u32 %s2604_s14, 5  ;;  %s1844_s5 = sshll.u32 %s2604_s14, 1 }
  0x28   : > { %2238 = vmatprep.subr.msk.bf16.mxu1 %vm419_vm0, %v1878_v26  ;;  %2132 = vmatprep.mubr.msk.bf16.mxu0 %vm406_vm1, %v2295_v30  ;;  %v2303_v42 = vld [vmem:[%s2456_s11 + $0x8] sm:$0xff]   ;;  %v2305_v44 = vld [vmem:[%s2456_s11 + $0x50] sm:$0xff]   ;;  %v2306_v48 = vld [vmem:[%s2456_s11 + $0x58] sm:$0xff]   ;;  %s2568_s4 = scalar_lea.vmem %s2595_s2, %s2003_s28  ;;  %s370_s8 = scalar_lea.vmem %s2596_s3, %s1844_s5 }
  0x29   : > { %v2304_v45 = vld [vmem:[%s2456_s11 + $0x10] sm:$0xff]   ;;  %v1984_v49 = vld [vmem:[%s2594_s1 + $0x20] sm:$0xf]  ;;  %v2312_v56 = vld [vmem:[%s2456_s11 + $0x38] sm:$0xff]  }
  0x2a   : > { %v2309_v50 = vld [vmem:[%s2456_s11 + $0x60] sm:$0xff]   ;;  %v2311_v53 = vld [vmem:[%s2456_s11 + $0x30] sm:$0xff]   ;;  %v2310_v54 = vld [vmem:[%s2456_s11 + $0x68] sm:$0xff]   ;;  %v1508_v58 = vsel %vm419_vm0, %v1984_v49, 0 }
  0x2b   : > { %v2308_v52 = vld [vmem:[%s2456_s11 + $0x20] sm:$0xff]   ;;  %v2314_v59 = vld [vmem:[%s2456_s11 + $0xc] sm:$0xff]   ;;  %v2317_v60 = vld [vmem:[%s2456_s11 + $0x14] sm:$0xff]  }
  0x2c   : > { %v2313_v55 = vld [vmem:[%s2456_s11 + $0x4] sm:$0xff]   ;;  %v2319_v62 = vld [vmem:[%s2456_s11 + $0x58] sm:$0xff]   ;;  %v2324_v4 = vld [vmem:[%s2456_s11 + $0x70] sm:$0xff]  }
  0x2d   : > { %2087 = vmatmul.mubr.msk.bf16.gmra.mrb[4].mxu1 %vm406_vm1, %v2294_v31  ;;  %v2315_v57 = vld [vmem:[%s2456_s11 + $0x40] sm:$0xff]   ;;  %v2316_v61 = vld [vmem:[%s2456_s11 + $0x48] sm:$0xff]  }
  0x2e   : > { %2092 = vmatprep.mubr.msk.bf16.mxu1 %vm406_vm1, %v2297_v32  ;;  %v2318_v63 = vld [vmem:[%s2456_s11 + $0x1c] sm:$0xff]   ;;  %v2322_v2 = vld [vmem:[%s2456_s11 + $0x68] sm:$0xff]  }
  0x2f   : > { %v2321_v0 = vld [vmem:[%s2456_s11 + $0x3c] sm:$0xff]   ;;  %v2323_v3 = vld [vmem:[%s2456_s11 + $0x44] sm:$0xff]  }
  0x30   : > { %v2320_v1 = vld [vmem:[%s2456_s11 + $0x60] sm:$0xff]  }
  0x31   : > { %2133 = vmatmul.mubr.msk.bf16.vlgmr.msra.gmra.mrb[0].mxu0 %vm406_vm1, %v2296_v33 }
  0x32   : > { %2141 = vmatpush3.bf16.msra.mxu0 %v1234_v35  ;;  %2136 = vmatprep.mubr.msk.bf16.mxu0 %vm406_vm1, %v2299_v34 }
  0x33   : > { %2244 = vmatprep.subr.msk.bf16.mxu0 %vm419_vm0, %v1966_v37 }
  0x35   : > { %2093 = vmatmul.mubr.msk.bf16.vlgmr.msra.gmra.mrb[0].mxu1 %vm406_vm1, %v2298_v36 }
  0x36   : > { %2101 = vmatpush3.bf16.msra.mxu1 %v679_v39  ;;  %2096 = vmatprep.mubr.msk.bf16.mxu1 %vm406_vm1, %v2301_v38 }
  0x37   : > { %2239 = vmatprep.subr.msk.bf16.mxu1 %vm419_vm0, %v1895_v40 }
  0x39   : > { %2137 = vmatmul.mubr.msk.bf16.gmra.mrb[4].mxu0 %vm406_vm1, %v2300_v41 }
  0x3a   : > { %2142 = vmatprep.mubr.msk.bf16.mxu0 %vm406_vm1, %v2303_v42 }
  0x3d   : > { %2097 = vmatmul.mubr.msk.bf16.gmra.mrb[4].mxu1 %vm406_vm1, %v2302_v43 }
  0x3e   : > { %2102 = vmatprep.mubr.msk.bf16.mxu1 %vm406_vm1, %v2305_v44 }
  0x41   : > { %2143 = vmatmul.mubr.msk.bf16.vlgmr.msra.gmra.mrb[0].mxu0 %vm406_vm1, %v2304_v45 }
  0x42   : > { %2151 = vmatpush3.bf16.msra.mxu0 %v1371_v47  ;;  %2146 = vmatprep.mubr.msk.bf16.mxu0 %vm406_vm1, %v2307_v46 }
  0x43   : > { %2245 = vmatprep.subr.msk.bf16.mxu0 %vm419_vm0, %v1984_v49 }
  0x45   : > { %2103 = vmatmul.mubr.msk.bf16.vlgmr.msra.gmra.mrb[0].mxu1 %vm406_vm1, %v2306_v48 }
  0x46   : > { %2111 = vmatpush3.bf16.msra.mxu1 %v820_v51  ;;  %2106 = vmatprep.mubr.msk.bf16.mxu1 %vm406_vm1, %v2309_v50 }
  0x47   : > { %2241 = vmatprep.subr.msk.bf16.mxu1 %vm419_vm0, %v2436_v16 }
  0x49   : > { %2147 = vmatmul.mubr.msk.bf16.gmra.mrb[4].mxu0 %vm406_vm1, %v2308_v52 }
  0x4a   : > { %2152 = vmatprep.mubr.msk.bf16.mxu0 %vm406_vm1, %v2311_v53 }
  0x4d   : > { %2107 = vmatmul.mubr.msk.bf16.gmra.mrb[4].mxu1 %vm406_vm1, %v2310_v54 }
  0x4e   : > { %2112 = vmatprep.mubr.msk.bf16.mxu1 %vm406_vm1, %v2313_v55 }
  0x51   : > { %2153 = vmatmul.mubr.msk.bf16.vlgmr.msra.gmra.mrb[0].mxu0 %vm406_vm1, %v2312_v56 }
  0x52   : > { %2161 = vmatpush3.bf16.msra.mxu0 %v1508_v58  ;;  %2156 = vmatprep.mubr.msk.bf16.mxu0 %vm406_vm1, %v2315_v57 }
  0x55   : > { %2113 = vmatmul.mubr.msk.bf16.vlgmr.msra.gmra.mrb[0].mxu1 %vm406_vm1, %v2314_v59 }
  0x56   : > { %2171 = vmatpush3.bf16.msra.mxu1 %v2445_v18  ;;  %2116 = vmatprep.mubr.msk.bf16.mxu1 %vm406_vm1, %v2317_v60 }
  0x59   : > { %2157 = vmatmul.mubr.msk.bf16.gmra.mrb[4].mxu0 %vm406_vm1, %v2316_v61 }
  0x5a   : > { %2162 = vmatprep.mubr.msk.bf16.mxu0 %vm406_vm1, %v2319_v62 }
  0x5d   : > { %2117 = vmatmul.mubr.msk.bf16.gmra.mrb[4].mxu1 %vm406_vm1, %v2318_v63 }
  0x5e   : > { %2126 = vmatprep.mubr.msk.bf16.mxu1 %vm406_vm1, %v2321_v0 }
  0x61   : > { %2163 = vmatmul.mubr.msk.bf16.vlgmr.msra.gmra.mrb[0].mxu0 %vm406_vm1, %v2320_v1 }
  0x62   : > { %2166 = vmatprep.mubr.msk.bf16.mxu0 %vm406_vm1, %v2322_v2 }
  0x69   : > { %2127 = vmatmul.mubr.msk.bf16.vlgmr.msra.gmra.mrb[4].mxu1 %vm406_vm1, %v2323_v3  ;;  %2167 = vmatmul.mubr.msk.bf16.gmra.mrb[4].mxu0 %vm406_vm1, %v2324_v4 }
 0x128   : > { %v2114_v5 = vpop.f32.mrb[0].mxu1 }
 0x129   : > { %v856_v6 = vpop.f32.mrb[1].mxu1 }
 0x12a   : > { %v2115_v7 = vpop.f32.mrb[2].mxu1 }
 0x12b   : > { %v859_v8 = vpop.f32.mrb[3].mxu1 }
 0x134   : > { %v2164_v9 = vpop.f32.mrb[0].mxu0 }
 0x135   : > { %v2172_v10 = vadd.f32 %v2164_v9, %v2114_v5  ;;  %v1544_v11 = vpop.f32.mrb[1].mxu0 }
 0x136   : > { %v2173_v12 = vadd.f32 %v1544_v11, %v856_v6  ;;  %v2165_v13 = vpop.f32.mrb[2].mxu0 }
 0x137   : > { %v2174_v14 = vadd.f32 %v2165_v13, %v2115_v7  ;;  %v1547_v15 = vpop.f32.mrb[3].mxu0  ;;  %v1662_v23 = vmul.f32 %v2172_v10, %v2172_v10 }
 0x138   : > { %v2175_v16 = vadd.f32 %v1547_v15, %v859_v8  ;;  %v1660_v18 = vmul.f32 %v2173_v12, %v2173_v12 }
 0x139   : > { %v2020_v17 = vpack.c.bf16 %v2174_v14, %v2172_v10  ;;  %v1663_v31 = vmul.f32 %v2174_v14, %v2174_v14 }
 0x13a   : > { %v2015_v19 = vpack.c.bf16 %v2175_v16, %v2173_v12  ;;  %v1647_v20 = vadd.f32 %v2175_v16, %v2173_v12  ;;  %v1661_v21 = vmul.f32 %v2175_v16, %v2175_v16 }
 0x13b   : > { %2032 = vst [vmem:[%s2568_s4 + $0x8] sm:$0xff] %v2020_v17  }
 0x13c   : > { %v2128_v22 = vpop.f32.mrb[4].mxu1  ;;  %2016 = vst [vmem:[%s2568_s4] sm:$0xff] %v2015_v19   ;;  %v1648_v24 = vadd.f32 %v2172_v10, %v1647_v20  ;;  %v1668_v25 = vadd.f32 %v1661_v21, %v1660_v18  ;;  %v2168_v26 = vpop.f32.mrb[4].mxu0 }
 0x13d   : > { %v1009_v27 = vpop.f32.mrb[5].mxu1  ;;  %v2176_v28 = vadd.f32 %v2168_v26, %v2128_v22  ;;  %v1560_v29 = vpop.f32.mrb[5].mxu0 }
 0x13e   : > { %v2129_v30 = vpop.f32.mrb[6].mxu1  ;;  %v1669_v32 = vadd.f32 %v1668_v25, %v1662_v23  ;;  %v2177_v33 = vadd.f32 %v1560_v29, %v1009_v27  ;;  %v1649_v34 = vadd.f32 %v2174_v14, %v1648_v24  ;;  %v2169_v35 = vpop.f32.mrb[6].mxu0 }
 0x13f   : > { %v1012_v36 = vpop.f32.mrb[7].mxu1  ;;  %v2178_v37 = vadd.f32 %v2169_v35, %v2129_v30  ;;  %v1563_v38 = vpop.f32.mrb[7].mxu0  ;;  %v1666_v48 = vmul.f32 %v2176_v28, %v2176_v28 }
 0x140   : > { %v1650_v39 = vadd.f32 %v2177_v33, %v1649_v34  ;;  %v1664_v40 = vmul.f32 %v2177_v33, %v2177_v33  ;;  %v1670_v41 = vadd.f32 %v1669_v32, %v1663_v31  ;;  %v2179_v42 = vadd.f32 %v1563_v38, %v1012_v36 }
 0x141   : > { %v2030_v43 = vpack.c.bf16 %v2178_v37, %v2176_v28  ;;  %v1667_v51 = vmul.f32 %v2178_v37, %v2178_v37 }
 0x142   : > { %v1671_v44 = vadd.f32 %v1670_v41, %v1664_v40  ;;  %v2025_v45 = vpack.c.bf16 %v2179_v42, %v2177_v33  ;;  %v1651_v46 = vadd.f32 %v2179_v42, %v1650_v39  ;;  %v1665_v47 = vmul.f32 %v2179_v42, %v2179_v42 }
 0x143   : > { %2034 = vst [vmem:[%s2568_s4 + $0x18] sm:$0xff] %v2030_v43  }
 0x144   : > { %2033 = vst [vmem:[%s2568_s4 + $0x10] sm:$0xff] %v2025_v45   ;;  %v1652_v49 = vadd.f32 %v2176_v28, %v1651_v46  ;;  %v1672_v50 = vadd.f32 %v1671_v44, %v1665_v47 }
 0x146   : > { %v1653_v52 = vadd.f32 %v2178_v37, %v1652_v49  ;;  %v1673_v53 = vadd.f32 %v1672_v50, %v1666_v48 }
 0x148   : > { %v1654_v54 = vrot.slane %v1653_v52, 4  ;;  %v1674_v55 = vadd.f32 %v1673_v53, %v1667_v51 }
 0x14a   : > { %v1655_v56 = vadd.f32 %v1654_v54, %v1653_v52  ;;  %v1675_v57 = vrot.slane %v1674_v55, 4 }
 0x14c   : > { %v1656_v58 = vrot.slane %v1655_v56, 2  ;;  %v1676_v59 = vadd.f32 %v1675_v57, %v1674_v55 }
 0x14e   : > { %v1657_v60 = vadd.f32 %v1656_v58, %v1655_v56  ;;  %v1677_v61 = vrot.slane %v1676_v59, 2 }
 0x150   : > { %v1658_v62 = vrot.slane %v1657_v60, 1  ;;  %v1678_v63 = vadd.f32 %v1677_v61, %v1676_v59 }
 0x152   : > { %v1679_v0 = vrot.slane %v1678_v63, 1  ;;  %v1659_v1 = vadd.f32 %v1658_v62, %v1657_v60 }
 0x154   : > { %v1680_v2 = vadd.f32 %v1679_v0, %v1678_v63 }
 0x156   : > { %v1682_v3 = vsel %vm1681_vm2, %v1659_v1, %v1680_v2 }
 0x157   : > { %1683 = vst [vmem:[%s370_s8] sm:$0x3] %v1682_v3 }
 0x158 PF: > { %s14_s16 = sadd.s32 1, %s2363_s16   ;;  %s2597_s12 = smov %s2351_s13 }
 0x159   : > { %p11_p10 = scmp.ge.s32.totalorder %s14_s16, 4   ;;  %s2598_s13 = smov %s2420_s20 }
 0x15a   : > { %s2599_s14 = smov %s2359_s15  ;;  %s2600_s15 = smov %s2602_s17 }
 0x15b   :  { %13 = sbr.rel (!%p11_p10) target bundleno = 3 (0x3), region = 133 }

</bundles_post_ra>
